<compile_context>
chip_gen: v7x
topology: tpu7x:2x2x1
jax: 0.10.0
libtpu: 0.0.40
codegen_flags: <defaults>
</compile_context>

<pallas_src>
import functools

import jax
import jax.numpy as jnp
from jax import lax
from jax.experimental import pallas as pl
from jax.experimental.pallas import tpu as pltpu


def _vmem_limit_bytes():
    # ~75% of physical VMEM, capped at 100 MiB.  Conservative 64 MiB fallback
    # (v7x physical size) if the query is unavailable.
    try:
        cap = getattr(pltpu.get_tpu_info(), "vmem_capacity_bytes",
                      64 * 1024 * 1024)
    except Exception:
        cap = 64 * 1024 * 1024
    return min(int(cap * 3 // 4), 100 * 1024 * 1024)


VMEM_LIMIT = _vmem_limit_bytes()


def _largest_divisor(n, cap):
    for d in range(min(n, cap), 0, -1):
        if n % d == 0:
            return d
    return 1


def _const_spec(shape):
    """BlockSpec for an operand whose block index never changes (weights).

    Requests single buffering (pl.Buffered(1)) so the pipeline does not
    double-buffer a tile that is only fetched once.
    """
    zeros = (0,) * len(shape)
    idx = lambda b: zeros
    try:
        return pl.BlockSpec(shape, idx, pipeline_mode=pl.Buffered(1))
    except Exception:  # older jax without pipeline_mode: fall back to default
        return pl.BlockSpec(shape, idx)


# ----------------------------------------------------------------------------
# In-kernel helpers
# ----------------------------------------------------------------------------
def _layernorm(x, g, b, eps=1e-5):
    # x: (T, C) f32, g/b: (1, C) f32  — matches torch.nn.LayerNorm(n_embd).
    mu = jnp.mean(x, axis=-1, keepdims=True)
    var = jnp.mean((x - mu) ** 2, axis=-1, keepdims=True)
    return (x - mu) * lax.rsqrt(var + eps) * g + b


# ----------------------------------------------------------------------------
# Fused per-layer kernel:
#   ln1 -> (fused-QKV causal MHA) + (causal dilated conv) + residual
#       -> ln2 -> MLP -> residual   [-> ln_f on the last layer]
# One batch element per grid step.
# ----------------------------------------------------------------------------
def block_kernel(x_ref, g1_ref, b1_ref, wqkv_ref, wpro_ref, bpro_ref,
                 convw_ref, convb_ref, g2_ref, b2_ref, w1_ref, bf1_ref,
                 w2_ref, bf2_ref, gf_ref, bff_ref, o_ref, *,
                 n_head, head_size, kernel_size, dilation, apply_final_ln):
    x = x_ref[0].astype(jnp.float32)                     # (T, C)
    T, C = x.shape

    # ---- ln1 (shared by attention and conv branches) ----
    ln1 = _layernorm(x, g1_ref[...], b1_ref[...])
    ln1_bf = ln1.astype(jnp.bfloat16)

    # ---- fused QKV projection: one (T,C)@(C,3C) bf16 matmul ----
    # (1/sqrt(hs) softmax scale pre-folded into the Q columns at init.)
    qkv = jnp.dot(ln1_bf, wqkv_ref[...],
                  preferred_element_type=jnp.float32).astype(jnp.bfloat16)

    row = lax.broadcasted_iota(jnp.int32, (T, T), 0)
    col = lax.broadcasted_iota(jnp.int32, (T, T), 1)
    causal = col <= row

    # ---- per-head causal attention, accumulated directly through head-sliced
    #      rows of the output projection (no concat, no wide intermediate) ----
    wpro = wpro_ref[...]                                 # (C, C) bf16, head-major rows
    attn = jnp.zeros((T, C), jnp.float32) + bpro_ref[...]
    # TODO(synk): for long T / many heads, switch to lax.fori_loop with
    # flash-style kv tiling to bound the (T,T) live ranges, and add a second
    # parallel grid axis (q tiles or heads) for v7x's 2 TensorCores.
    for h in range(n_head):
        lo = h * head_size
        q = qkv[:, lo:lo + head_size]                    # (T, hs) bf16
        k = qkv[:, C + lo:C + lo + head_size]
        v = qkv[:, 2 * C + lo:2 * C + lo + head_size]
        # q @ k^T without an explicit transpose (contracting dims (1,1)).
        s = lax.dot_general(q, k, (((1,), (1,)), ((), ())),
                            preferred_element_type=jnp.float32)    # (T, T) f32
        s = jnp.where(causal, s, -jnp.inf)
        s = s - jnp.max(s, axis=-1, keepdims=True)
        p = jnp.exp(s)
        p = p * pl.reciprocal(jnp.sum(p, axis=-1, keepdims=True), approx=True)
        ctx = jnp.dot(p.astype(jnp.bfloat16), v,
                      preferred_element_type=jnp.float32)           # (T, hs)
        attn = attn + jnp.dot(ctx.astype(jnp.bfloat16),
                              wpro[lo:lo + head_size, :],
                              preferred_element_type=jnp.float32)

    # ---- causal dilated conv on ln1(x):
    #      one zero-padded buffer + ONE (T, K*C) @ (K*C, C) matmul ----
    pad = (kernel_size - 1) * dilation                   # compile-time constant
    if pad > 0:
        padded = jnp.concatenate(
            [jnp.zeros((pad, C), jnp.bfloat16), ln1_bf], axis=0)   # (pad+T, C)
    else:
        padded = ln1_bf
    taps = jnp.concatenate(
        [padded[kk * dilation:kk * dilation + T, :] for kk in range(kernel_size)],
        axis=-1)                                         # (T, K*C)
    conv = (jnp.dot(taps, convw_ref[...], preferred_element_type=jnp.float32)
            + convb_ref[...])

    x2 = x + attn + conv                                 # first residual

    # ---- ln2 + MLP + residual (fused: no HBM round trip) ----
    ln2 = _layernorm(x2, g2_ref[...], b2_ref[...])
    hmid = jnp.maximum(
        jnp.dot(ln2.astype(jnp.bfloat16), w1_ref[...],
                preferred_element_type=jnp.float32) + bf1_ref[...], 0.0)
    ff = (jnp.dot(hmid.astype(jnp.bfloat16), w2_ref[...],
                  preferred_element_type=jnp.float32) + bf2_ref[...])
    out = x2 + ff

    # ---- final LayerNorm hoisted into the last layer (once, not per vocab tile)
    if apply_final_ln:
        out = _layernorm(out, gf_ref[...], bff_ref[...])

    o_ref[0] = out.astype(o_ref.dtype)


# ----------------------------------------------------------------------------
# lm_head kernel: pure (T,C)@(C,Vt) matmul + bias (ln_f already applied).
# Weight-stationary: vocab tiles on the OUTER grid axis, batch inner.
# ----------------------------------------------------------------------------
def head_kernel(x_ref, w_ref, b_ref, o_ref):
    o_ref[0] = (jnp.dot(x_ref[0], w_ref[...],
                        preferred_element_type=jnp.float32)
                + b_ref[...]).astype(o_ref.dtype)


# ----------------------------------------------------------------------------
# Wrappers
# ----------------------------------------------------------------------------
def run_block(x, layer, lnf_g, lnf_b, *, n_head, head_size, kernel_size,
              dilation, apply_final_ln):
    B, T, C = x.shape
    H = layer["w1"].shape[1]
    kern = functools.partial(block_kernel, n_head=n_head, head_size=head_size,
                             kernel_size=kernel_size, dilation=dilation,
                             apply_final_ln=apply_final_ln)

    in_specs = [
        pl.BlockSpec((1, T, C), lambda b: (b, 0, 0)),     # x (aliased to output)
        _const_spec((1, C)), _const_spec((1, C)),          # ln1 gamma/beta
        _const_spec((C, 3 * C)),                           # fused Wqkv (scale folded)
        _const_spec((C, C)), _const_spec((1, C)),          # out-proj W, b
        _const_spec((kernel_size * C, C)),                 # conv W flattened (K*Cin, Cout)
        _const_spec((1, C)),                               # conv b
        _const_spec((1, C)), _const_spec((1, C)),          # ln2 gamma/beta
        _const_spec((C, H)), _const_spec((1, H)),          # fc1 W, b
        _const_spec((H, C)), _const_spec((1, C)),          # fc2 W, b
        _const_spec((1, C)), _const_spec((1, C)),          # ln_f gamma/beta (last layer)
    ]
    return pl.pallas_call(
        kern,
        out_shape=jax.ShapeDtypeStruct((B, T, C), jnp.bfloat16),
        grid=(B,),
        in_specs=in_specs,
        out_specs=pl.BlockSpec((1, T, C), lambda b: (b, 0, 0)),
        input_output_aliases={0: 0},                      # reuse residual HBM buffer
        compiler_params=pltpu.CompilerParams(
            dimension_semantics=("parallel",),
            vmem_limit_bytes=VMEM_LIMIT),
    )(x, layer["ln1_g"], layer["ln1_b"], layer["wqkv"],
      layer["w_proj"], layer["b_proj"], layer["conv_w"], layer["conv_b"],
      layer["ln2_g"], layer["ln2_b"], layer["w1"], layer["b1"],
      layer["w2"], layer["b2"], lnf_g, lnf_b)


def run_head(x, lm_w, lm_b):
    # x already has ln_f applied (bf16).
    B, T, C = x.shape
    V = lm_w.shape[1]
    Vp = ((V + 127) // 128) * 128                         # lane-dense stores
    if Vp != V:
        lm_w = jnp.pad(lm_w, ((0, 0), (0, Vp - V)))
        lm_b = jnp.pad(lm_b, ((0, 0), (0, Vp - V)))
    Vt = 128 * _largest_divisor(Vp // 128, 8)             # <= 1024-lane tiles (v7x VMEM)
    nV = Vp // Vt

    in_specs = [
        pl.BlockSpec((1, T, C), lambda v, b: (b, 0, 0)),   # activations (inner axis)
        pl.BlockSpec((C, Vt), lambda v, b: (0, v)),        # lm_w: changes only on outer axis
        pl.BlockSpec((1, Vt), lambda v, b: (0, v)),        # lm_b vocab tile
    ]
    logits = pl.pallas_call(
        head_kernel,
        out_shape=jax.ShapeDtypeStruct((B, T, Vp), jnp.float32),
        grid=(nV, B),                                     # vocab outer -> weight-stationary
        in_specs=in_specs,
        out_specs=pl.BlockSpec((1, T, Vt), lambda v, b: (b, 0, v)),
        compiler_params=pltpu.CompilerParams(
            dimension_semantics=("parallel", "arbitrary"),
            vmem_limit_bytes=VMEM_LIMIT),
    )(x, lm_w, lm_b)
    if Vp == V:
        return logits
    # NOTE: downstream consumers that can mask should take the Vp-padded logits
    # directly to avoid this extra (B,T,V) materialization.
    return logits[:, :, :V]


# ----------------------------------------------------------------------------
# Deterministic parameter init (mirrors Conv1dGPT._init_weights: N(0,0.02) for
# Linear/Embedding/Conv weights, zero biases, LayerNorm gamma=1 beta=0).
# Weights that feed the MXU are stored bf16; biases/LN params stay f32.
# ----------------------------------------------------------------------------
def init_params(key, *, vocab_size, n_embd, block_size, n_head, n_layer,
                kernel_size):
    C = n_embd
    hs = C // n_head
    normal = lambda k, shape: 0.02 * jax.random.normal(k, shape, jnp.float32)
    keys = jax.random.split(key, 3 + n_layer)
    params = {
        "tok_emb": normal(keys[0], (vocab_size, C)),
        "pos_emb": normal(keys[1], (block_size, C)),
        "lnf_g": jnp.ones((1, C), jnp.float32),
        "lnf_b": jnp.zeros((1, C), jnp.float32),
    }
    lm_keys = jax.random.split(keys[2], 2)
    params["lm_w"] = normal(lm_keys[0], (C, vocab_size)).astype(jnp.bfloat16)
    params["lm_b"] = jnp.zeros((1, vocab_size), jnp.float32)

    def to_wide(w):                                       # (H, C, hs) -> (C, H*hs)
        return jnp.transpose(w, (1, 0, 2)).reshape(C, n_head * hs)

    layers = []
    for i in range(n_layer):
        lk = jax.random.split(keys[3 + i], 7)
        wq = normal(lk[0], (n_head, C, hs)) * (hs ** -0.5)  # fold softmax scale
        wk = normal(lk[1], (n_head, C, hs))
        wv = normal(lk[2], (n_head, C, hs))
        wqkv = jnp.concatenate([to_wide(wq), to_wide(wk), to_wide(wv)], axis=1)
        # torch Conv1d weight (C_out, C_in, K) -> (K, C_in, C_out) -> (K*C_in, C_out)
        conv_w_torch = normal(lk[4], (C, C, kernel_size))
        conv_w = jnp.transpose(conv_w_torch, (2, 1, 0)).reshape(
            kernel_size * C, C)
        layers.append(dict(
            ln1_g=jnp.ones((1, C), jnp.float32),
            ln1_b=jnp.zeros((1, C), jnp.float32),
            wqkv=wqkv.astype(jnp.bfloat16),
            w_proj=normal(lk[3], (n_head * hs, C)).astype(jnp.bfloat16),
            b_proj=jnp.zeros((1, C), jnp.float32),
            conv_w=conv_w.astype(jnp.bfloat16),
            conv_b=jnp.zeros((1, C), jnp.float32),
            ln2_g=jnp.ones((1, C), jnp.float32),
            ln2_b=jnp.zeros((1, C), jnp.float32),
            w1=normal(lk[5], (C, 4 * C)).astype(jnp.bfloat16),
            b1=jnp.zeros((1, 4 * C), jnp.float32),
            w2=normal(lk[6], (4 * C, C)).astype(jnp.bfloat16),
            b2=jnp.zeros((1, C), jnp.float32),
        ))
    params["layers"] = layers
    return params


def conv1d_gpt_forward(idx, params, *, n_head, kernel_size):
    # idx: (B, T) int32.  Returns logits (B, T, vocab).
    B, T = idx.shape
    C = params["tok_emb"].shape[1]
    hs = C // n_head

    tok_emb = params["tok_emb"][idx]                     # (B, T, C) gather (glue)
    pos_emb = params["pos_emb"][:T]                      # (T, C)
    x = (tok_emb + pos_emb).astype(jnp.bfloat16)         # bf16 inter-layer acts

    n_layer = len(params["layers"])
    for i, layer in enumerate(params["layers"]):
        dilation = 2 ** i                                # Block(dilation=2**i)
        x = run_block(x, layer, params["lnf_g"], params["lnf_b"],
                      n_head=n_head, head_size=hs, kernel_size=kernel_size,
                      dilation=dilation,
                      apply_final_ln=(i == n_layer - 1))

    if n_layer == 0:                                     # degenerate case: ln_f in JAX
        xf = x.astype(jnp.float32)
        mu = xf.mean(-1, keepdims=True)
        var = ((xf - mu) ** 2).mean(-1, keepdims=True)
        x = ((xf - mu) * lax.rsqrt(var + 1e-5) * params["lnf_g"]
             + params["lnf_b"]).astype(jnp.bfloat16)

    logits = run_head(x, params["lm_w"], params["lm_b"])
    # TODO(synk): cross-entropy loss path (targets=...) not implemented;
    # this mirrors the targets=None branch (logits only).
    return logits


# ----------------------------------------------------------------------------
if __name__ == "__main__":
    vocab_size = 65
    n_embd = 32
    block_size = 8
    n_head = 4
    n_layer = 2
    kernel_size = 3
    # dropout = 0.0 (inference: identity), conv=True branch exercised.
    B, T = 2, block_size

    key = jax.random.PRNGKey(0)
    pkey, ikey = jax.random.split(key)
    params = init_params(pkey, vocab_size=vocab_size, n_embd=n_embd,
                         block_size=block_size, n_head=n_head,
                         n_layer=n_layer, kernel_size=kernel_size)
    idx = jax.random.randint(ikey, (B, T), 0, vocab_size, dtype=jnp.int32)

    fwd = jax.jit(functools.partial(conv1d_gpt_forward, n_head=n_head,
                                    kernel_size=kernel_size))
    logits = fwd(idx, params)
    jax.block_until_ready(logits)
    assert logits.shape == (B, T, vocab_size)
    assert bool(jnp.all(jnp.isfinite(logits)))
    print("KERNEL_OK")
</pallas_src>

<mosaic_0001>
module attributes {stable_mosaic.version = 11 : i64} {
  func.func @block_kernel(%arg0: i32, %arg1: memref<1x8x32xbf16, #tpu.memory_space<vmem>>, %arg2: memref<1x32xf32, #tpu.memory_space<vmem>>, %arg3: memref<1x32xf32, #tpu.memory_space<vmem>>, %arg4: memref<32x96xbf16, #tpu.memory_space<vmem>>, %arg5: memref<32x32xbf16, #tpu.memory_space<vmem>>, %arg6: memref<1x32xf32, #tpu.memory_space<vmem>>, %arg7: memref<96x32xbf16, #tpu.memory_space<vmem>>, %arg8: memref<1x32xf32, #tpu.memory_space<vmem>>, %arg9: memref<1x32xf32, #tpu.memory_space<vmem>>, %arg10: memref<1x32xf32, #tpu.memory_space<vmem>>, %arg11: memref<32x128xbf16, #tpu.memory_space<vmem>>, %arg12: memref<1x128xf32, #tpu.memory_space<vmem>>, %arg13: memref<128x32xbf16, #tpu.memory_space<vmem>>, %arg14: memref<1x32xf32, #tpu.memory_space<vmem>>, %arg15: memref<1x32xf32, #tpu.memory_space<vmem>>, %arg16: memref<1x32xf32, #tpu.memory_space<vmem>>, %arg17: memref<1x8x32xbf16, #tpu.memory_space<vmem>>) attributes {dimension_semantics = [#tpu.dimension_semantics<parallel>], iteration_bounds = array<i64: 2>, scalar_prefetch = 0 : i64, scratch_operands = 0 : i64, tpu.core_type = #tpu.core_type<tc>, window_params = [{transform_indices = @transform_0, window_bounds = array<i64: 1, 8, 32>}, {pipeline_mode = #tpu.pipeline_mode<synchronous>, transform_indices = @transform_1, window_bounds = array<i64: 1, 32>}, {pipeline_mode = #tpu.pipeline_mode<synchronous>, transform_indices = @transform_2, window_bounds = array<i64: 1, 32>}, {pipeline_mode = #tpu.pipeline_mode<synchronous>, transform_indices = @transform_3, window_bounds = array<i64: 32, 96>}, {pipeline_mode = #tpu.pipeline_mode<synchronous>, transform_indices = @transform_4, window_bounds = array<i64: 32, 32>}, {pipeline_mode = #tpu.pipeline_mode<synchronous>, transform_indices = @transform_5, window_bounds = array<i64: 1, 32>}, {pipeline_mode = #tpu.pipeline_mode<synchronous>, transform_indices = @transform_6, window_bounds = array<i64: 96, 32>}, {pipeline_mode = #tpu.pipeline_mode<synchronous>, transform_indices = @transform_7, window_bounds = array<i64: 1, 32>}, {pipeline_mode = #tpu.pipeline_mode<synchronous>, transform_indices = @transform_8, window_bounds = array<i64: 1, 32>}, {pipeline_mode = #tpu.pipeline_mode<synchronous>, transform_indices = @transform_9, window_bounds = array<i64: 1, 32>}, {pipeline_mode = #tpu.pipeline_mode<synchronous>, transform_indices = @transform_10, window_bounds = array<i64: 32, 128>}, {pipeline_mode = #tpu.pipeline_mode<synchronous>, transform_indices = @transform_11, window_bounds = array<i64: 1, 128>}, {pipeline_mode = #tpu.pipeline_mode<synchronous>, transform_indices = @transform_12, window_bounds = array<i64: 128, 32>}, {pipeline_mode = #tpu.pipeline_mode<synchronous>, transform_indices = @transform_13, window_bounds = array<i64: 1, 32>}, {pipeline_mode = #tpu.pipeline_mode<synchronous>, transform_indices = @transform_14, window_bounds = array<i64: 1, 32>}, {pipeline_mode = #tpu.pipeline_mode<synchronous>, transform_indices = @transform_15, window_bounds = array<i64: 1, 32>}, {transform_indices = @transform_16, window_bounds = array<i64: 1, 8, 32>}]} {
    %c0 = arith.constant 0 : index
    %c0_0 = arith.constant 0 : index
    %c0_1 = arith.constant 0 : index
    %0 = vector.load %arg1[%c0, %c0_0, %c0_1] : memref<1x8x32xbf16, #tpu.memory_space<vmem>>, vector<1x8x32xbf16>
    %1 = vector.shape_cast %0 : vector<1x8x32xbf16> to vector<8x32xbf16>
    %2 = arith.extf %1 : vector<8x32xbf16> to vector<8x32xf32>
    %c0_2 = arith.constant 0 : index
    %c0_3 = arith.constant 0 : index
    %3 = vector.load %arg2[%c0_2, %c0_3] : memref<1x32xf32, #tpu.memory_space<vmem>>, vector<1x32xf32>
    %c0_4 = arith.constant 0 : index
    %c0_5 = arith.constant 0 : index
    %4 = vector.load %arg3[%c0_4, %c0_5] : memref<1x32xf32, #tpu.memory_space<vmem>>, vector<1x32xf32>
    %cst = arith.constant dense<0.000000e+00> : vector<8xf32>
    %5 = vector.multi_reduction <add>, %2, %cst [1] : vector<8x32xf32> to vector<8xf32>
    %6 = vector.shape_cast %5 : vector<8xf32> to vector<8x1xf32>
    %cst_6 = arith.constant 3.200000e+01 : f32
    %7 = vector.broadcast %cst_6 : f32 to vector<8x1xf32>
    %8 = arith.divf %6, %7 : vector<8x1xf32>
    %9 = vector.broadcast %8 : vector<8x1xf32> to vector<8x32xf32>
    %10 = arith.subf %2, %9 : vector<8x32xf32>
    %11 = arith.mulf %10, %10 : vector<8x32xf32>
    %cst_7 = arith.constant dense<0.000000e+00> : vector<8xf32>
    %12 = vector.multi_reduction <add>, %11, %cst_7 [1] : vector<8x32xf32> to vector<8xf32>
    %13 = vector.shape_cast %12 : vector<8xf32> to vector<8x1xf32>
    %cst_8 = arith.constant 3.200000e+01 : f32
    %14 = vector.broadcast %cst_8 : f32 to vector<8x1xf32>
    %15 = arith.divf %13, %14 : vector<8x1xf32>
    %16 = vector.broadcast %8 : vector<8x1xf32> to vector<8x32xf32>
    %17 = arith.subf %2, %16 : vector<8x32xf32>
    %cst_9 = arith.constant 9.99999974E-6 : f32
    %18 = vector.broadcast %cst_9 : f32 to vector<8x1xf32>
    %19 = arith.addf %15, %18 : vector<8x1xf32>
    %20 = math.rsqrt %19 : vector<8x1xf32>
    %21 = vector.broadcast %20 : vector<8x1xf32> to vector<8x32xf32>
    %22 = arith.mulf %17, %21 : vector<8x32xf32>
    %23 = vector.broadcast %3 : vector<1x32xf32> to vector<8x32xf32>
    %24 = arith.mulf %22, %23 : vector<8x32xf32>
    %25 = vector.broadcast %4 : vector<1x32xf32> to vector<8x32xf32>
    %26 = arith.addf %24, %25 : vector<8x32xf32>
    %27 = arith.truncf %26 : vector<8x32xf32> to vector<8x32xbf16>
    %c0_10 = arith.constant 0 : index
    %c0_11 = arith.constant 0 : index
    %28 = vector.load %arg4[%c0_10, %c0_11] : memref<32x96xbf16, #tpu.memory_space<vmem>>, vector<32x96xbf16>
    %cst_12 = arith.constant dense<0.000000e+00> : vector<8x96xf32>
    %29 = tpu.matmul %27, %28, %cst_12 {dimension_numbers = #tpu.dot_dimension_numbers<[1], [0], [0], [1], [0, 0, 1, 1], [], []>} : vector<8x32xbf16>, vector<32x96xbf16>, vector<8x96xf32> -> vector<8x96xf32>
    %30 = arith.truncf %29 : vector<8x96xf32> to vector<8x96xbf16>
    %31 = tpu.iota {dimensions = array<i32: 0>} : vector<8x8xi32>
    %32 = tpu.iota {dimensions = array<i32: 1>} : vector<8x8xi32>
    %33 = arith.cmpi sle, %32, %31 : vector<8x8xi32>
    %c0_13 = arith.constant 0 : index
    %c0_14 = arith.constant 0 : index
    %34 = vector.load %arg5[%c0_13, %c0_14] : memref<32x32xbf16, #tpu.memory_space<vmem>>, vector<32x32xbf16>
    %cst_15 = arith.constant 0.000000e+00 : f32
    %35 = vector.broadcast %cst_15 : f32 to vector<8x32xf32>
    %c0_16 = arith.constant 0 : index
    %c0_17 = arith.constant 0 : index
    %36 = vector.load %arg6[%c0_16, %c0_17] : memref<1x32xf32, #tpu.memory_space<vmem>>, vector<1x32xf32>
    %37 = vector.broadcast %36 : vector<1x32xf32> to vector<8x32xf32>
    %38 = arith.addf %35, %37 : vector<8x32xf32>
    %39 = vector.extract_strided_slice %30 {offsets = [0, 0], sizes = [8, 8], strides = [1, 1]} : vector<8x96xbf16> to vector<8x8xbf16>
    %40 = vector.extract_strided_slice %30 {offsets = [0, 32], sizes = [8, 8], strides = [1, 1]} : vector<8x96xbf16> to vector<8x8xbf16>
    %41 = vector.extract_strided_slice %30 {offsets = [0, 64], sizes = [8, 8], strides = [1, 1]} : vector<8x96xbf16> to vector<8x8xbf16>
    %cst_18 = arith.constant dense<0.000000e+00> : vector<8x8xf32>
    %42 = tpu.matmul %39, %40, %cst_18 {dimension_numbers = #tpu.dot_dimension_numbers<[1], [1], [0], [0], [0, 0, 1, 0], [], []>} : vector<8x8xbf16>, vector<8x8xbf16>, vector<8x8xf32> -> vector<8x8xf32>
    %cst_19 = arith.constant 0xFF800000 : f32
    %43 = vector.broadcast %cst_19 : f32 to vector<8x8xf32>
    %44 = arith.select %33, %42, %43 : vector<8x8xi1>, vector<8x8xf32>
    %cst_20 = arith.constant dense<0xFF800000> : vector<8xf32>
    %45 = vector.multi_reduction <maximumf>, %44, %cst_20 [1] : vector<8x8xf32> to vector<8xf32>
    %46 = vector.shape_cast %45 : vector<8xf32> to vector<8x1xf32>
    %47 = vector.broadcast %46 : vector<8x1xf32> to vector<8x8xf32>
    %48 = arith.subf %44, %47 : vector<8x8xf32>
    %49 = math.exp %48 : vector<8x8xf32>
    %cst_21 = arith.constant dense<0.000000e+00> : vector<8xf32>
    %50 = vector.multi_reduction <add>, %49, %cst_21 [1] : vector<8x8xf32> to vector<8xf32>
    %51 = vector.shape_cast %50 : vector<8xf32> to vector<8x1xf32>
    %52 = tpu.reciprocal %51 {approx = true} : vector<8x1xf32> -> vector<8x1xf32>
    %53 = vector.broadcast %52 : vector<8x1xf32> to vector<8x8xf32>
    %54 = arith.mulf %49, %53 : vector<8x8xf32>
    %55 = arith.truncf %54 : vector<8x8xf32> to vector<8x8xbf16>
    %cst_22 = arith.constant dense<0.000000e+00> : vector<8x8xf32>
    %56 = tpu.matmul %55, %41, %cst_22 {dimension_numbers = #tpu.dot_dimension_numbers<[1], [0], [0], [1], [0, 0, 1, 1], [], []>} : vector<8x8xbf16>, vector<8x8xbf16>, vector<8x8xf32> -> vector<8x8xf32>
    %57 = arith.truncf %56 : vector<8x8xf32> to vector<8x8xbf16>
    %58 = vector.extract_strided_slice %34 {offsets = [0, 0], sizes = [8, 32], strides = [1, 1]} : vector<32x32xbf16> to vector<8x32xbf16>
    %cst_23 = arith.constant dense<0.000000e+00> : vector<8x32xf32>
    %59 = tpu.matmul %57, %58, %cst_23 {dimension_numbers = #tpu.dot_dimension_numbers<[1], [0], [0], [1], [0, 0, 1, 1], [], []>} : vector<8x8xbf16>, vector<8x32xbf16>, vector<8x32xf32> -> vector<8x32xf32>
    %60 = arith.addf %38, %59 : vector<8x32xf32>
    %61 = vector.extract_strided_slice %30 {offsets = [0, 8], sizes = [8, 8], strides = [1, 1]} : vector<8x96xbf16> to vector<8x8xbf16>
    %62 = vector.extract_strided_slice %30 {offsets = [0, 40], sizes = [8, 8], strides = [1, 1]} : vector<8x96xbf16> to vector<8x8xbf16>
    %63 = vector.extract_strided_slice %30 {offsets = [0, 72], sizes = [8, 8], strides = [1, 1]} : vector<8x96xbf16> to vector<8x8xbf16>
    %cst_24 = arith.constant dense<0.000000e+00> : vector<8x8xf32>
    %64 = tpu.matmul %61, %62, %cst_24 {dimension_numbers = #tpu.dot_dimension_numbers<[1], [1], [0], [0], [0, 0, 1, 0], [], []>} : vector<8x8xbf16>, vector<8x8xbf16>, vector<8x8xf32> -> vector<8x8xf32>
    %cst_25 = arith.constant 0xFF800000 : f32
    %65 = vector.broadcast %cst_25 : f32 to vector<8x8xf32>
    %66 = arith.select %33, %64, %65 : vector<8x8xi1>, vector<8x8xf32>
    %cst_26 = arith.constant dense<0xFF800000> : vector<8xf32>
    %67 = vector.multi_reduction <maximumf>, %66, %cst_26 [1] : vector<8x8xf32> to vector<8xf32>
    %68 = vector.shape_cast %67 : vector<8xf32> to vector<8x1xf32>
    %69 = vector.broadcast %68 : vector<8x1xf32> to vector<8x8xf32>
    %70 = arith.subf %66, %69 : vector<8x8xf32>
    %71 = math.exp %70 : vector<8x8xf32>
    %cst_27 = arith.constant dense<0.000000e+00> : vector<8xf32>
    %72 = vector.multi_reduction <add>, %71, %cst_27 [1] : vector<8x8xf32> to vector<8xf32>
    %73 = vector.shape_cast %72 : vector<8xf32> to vector<8x1xf32>
    %74 = tpu.reciprocal %73 {approx = true} : vector<8x1xf32> -> vector<8x1xf32>
    %75 = vector.broadcast %74 : vector<8x1xf32> to vector<8x8xf32>
    %76 = arith.mulf %71, %75 : vector<8x8xf32>
    %77 = arith.truncf %76 : vector<8x8xf32> to vector<8x8xbf16>
    %cst_28 = arith.constant dense<0.000000e+00> : vector<8x8xf32>
    %78 = tpu.matmul %77, %63, %cst_28 {dimension_numbers = #tpu.dot_dimension_numbers<[1], [0], [0], [1], [0, 0, 1, 1], [], []>} : vector<8x8xbf16>, vector<8x8xbf16>, vector<8x8xf32> -> vector<8x8xf32>
    %79 = arith.truncf %78 : vector<8x8xf32> to vector<8x8xbf16>
    %80 = vector.extract_strided_slice %34 {offsets = [8, 0], sizes = [8, 32], strides = [1, 1]} : vector<32x32xbf16> to vector<8x32xbf16>
    %cst_29 = arith.constant dense<0.000000e+00> : vector<8x32xf32>
    %81 = tpu.matmul %79, %80, %cst_29 {dimension_numbers = #tpu.dot_dimension_numbers<[1], [0], [0], [1], [0, 0, 1, 1], [], []>} : vector<8x8xbf16>, vector<8x32xbf16>, vector<8x32xf32> -> vector<8x32xf32>
    %82 = arith.addf %60, %81 : vector<8x32xf32>
    %83 = vector.extract_strided_slice %30 {offsets = [0, 16], sizes = [8, 8], strides = [1, 1]} : vector<8x96xbf16> to vector<8x8xbf16>
    %84 = vector.extract_strided_slice %30 {offsets = [0, 48], sizes = [8, 8], strides = [1, 1]} : vector<8x96xbf16> to vector<8x8xbf16>
    %85 = vector.extract_strided_slice %30 {offsets = [0, 80], sizes = [8, 8], strides = [1, 1]} : vector<8x96xbf16> to vector<8x8xbf16>
    %cst_30 = arith.constant dense<0.000000e+00> : vector<8x8xf32>
    %86 = tpu.matmul %83, %84, %cst_30 {dimension_numbers = #tpu.dot_dimension_numbers<[1], [1], [0], [0], [0, 0, 1, 0], [], []>} : vector<8x8xbf16>, vector<8x8xbf16>, vector<8x8xf32> -> vector<8x8xf32>
    %cst_31 = arith.constant 0xFF800000 : f32
    %87 = vector.broadcast %cst_31 : f32 to vector<8x8xf32>
    %88 = arith.select %33, %86, %87 : vector<8x8xi1>, vector<8x8xf32>
    %cst_32 = arith.constant dense<0xFF800000> : vector<8xf32>
    %89 = vector.multi_reduction <maximumf>, %88, %cst_32 [1] : vector<8x8xf32> to vector<8xf32>
    %90 = vector.shape_cast %89 : vector<8xf32> to vector<8x1xf32>
    %91 = vector.broadcast %90 : vector<8x1xf32> to vector<8x8xf32>
    %92 = arith.subf %88, %91 : vector<8x8xf32>
    %93 = math.exp %92 : vector<8x8xf32>
    %cst_33 = arith.constant dense<0.000000e+00> : vector<8xf32>
    %94 = vector.multi_reduction <add>, %93, %cst_33 [1] : vector<8x8xf32> to vector<8xf32>
    %95 = vector.shape_cast %94 : vector<8xf32> to vector<8x1xf32>
    %96 = tpu.reciprocal %95 {approx = true} : vector<8x1xf32> -> vector<8x1xf32>
    %97 = vector.broadcast %96 : vector<8x1xf32> to vector<8x8xf32>
    %98 = arith.mulf %93, %97 : vector<8x8xf32>
    %99 = arith.truncf %98 : vector<8x8xf32> to vector<8x8xbf16>
    %cst_34 = arith.constant dense<0.000000e+00> : vector<8x8xf32>
    %100 = tpu.matmul %99, %85, %cst_34 {dimension_numbers = #tpu.dot_dimension_numbers<[1], [0], [0], [1], [0, 0, 1, 1], [], []>} : vector<8x8xbf16>, vector<8x8xbf16>, vector<8x8xf32> -> vector<8x8xf32>
    %101 = arith.truncf %100 : vector<8x8xf32> to vector<8x8xbf16>
    %102 = vector.extract_strided_slice %34 {offsets = [16, 0], sizes = [8, 32], strides = [1, 1]} : vector<32x32xbf16> to vector<8x32xbf16>
    %cst_35 = arith.constant dense<0.000000e+00> : vector<8x32xf32>
    %103 = tpu.matmul %101, %102, %cst_35 {dimension_numbers = #tpu.dot_dimension_numbers<[1], [0], [0], [1], [0, 0, 1, 1], [], []>} : vector<8x8xbf16>, vector<8x32xbf16>, vector<8x32xf32> -> vector<8x32xf32>
    %104 = arith.addf %82, %103 : vector<8x32xf32>
    %105 = vector.extract_strided_slice %30 {offsets = [0, 24], sizes = [8, 8], strides = [1, 1]} : vector<8x96xbf16> to vector<8x8xbf16>
    %106 = vector.extract_strided_slice %30 {offsets = [0, 56], sizes = [8, 8], strides = [1, 1]} : vector<8x96xbf16> to vector<8x8xbf16>
    %107 = vector.extract_strided_slice %30 {offsets = [0, 88], sizes = [8, 8], strides = [1, 1]} : vector<8x96xbf16> to vector<8x8xbf16>
    %cst_36 = arith.constant dense<0.000000e+00> : vector<8x8xf32>
    %108 = tpu.matmul %105, %106, %cst_36 {dimension_numbers = #tpu.dot_dimension_numbers<[1], [1], [0], [0], [0, 0, 1, 0], [], []>} : vector<8x8xbf16>, vector<8x8xbf16>, vector<8x8xf32> -> vector<8x8xf32>
    %cst_37 = arith.constant 0xFF800000 : f32
    %109 = vector.broadcast %cst_37 : f32 to vector<8x8xf32>
    %110 = arith.select %33, %108, %109 : vector<8x8xi1>, vector<8x8xf32>
    %cst_38 = arith.constant dense<0xFF800000> : vector<8xf32>
    %111 = vector.multi_reduction <maximumf>, %110, %cst_38 [1] : vector<8x8xf32> to vector<8xf32>
    %112 = vector.shape_cast %111 : vector<8xf32> to vector<8x1xf32>
    %113 = vector.broadcast %112 : vector<8x1xf32> to vector<8x8xf32>
    %114 = arith.subf %110, %113 : vector<8x8xf32>
    %115 = math.exp %114 : vector<8x8xf32>
    %cst_39 = arith.constant dense<0.000000e+00> : vector<8xf32>
    %116 = vector.multi_reduction <add>, %115, %cst_39 [1] : vector<8x8xf32> to vector<8xf32>
    %117 = vector.shape_cast %116 : vector<8xf32> to vector<8x1xf32>
    %118 = tpu.reciprocal %117 {approx = true} : vector<8x1xf32> -> vector<8x1xf32>
    %119 = vector.broadcast %118 : vector<8x1xf32> to vector<8x8xf32>
    %120 = arith.mulf %115, %119 : vector<8x8xf32>
    %121 = arith.truncf %120 : vector<8x8xf32> to vector<8x8xbf16>
    %cst_40 = arith.constant dense<0.000000e+00> : vector<8x8xf32>
    %122 = tpu.matmul %121, %107, %cst_40 {dimension_numbers = #tpu.dot_dimension_numbers<[1], [0], [0], [1], [0, 0, 1, 1], [], []>} : vector<8x8xbf16>, vector<8x8xbf16>, vector<8x8xf32> -> vector<8x8xf32>
    %123 = arith.truncf %122 : vector<8x8xf32> to vector<8x8xbf16>
    %124 = vector.extract_strided_slice %34 {offsets = [24, 0], sizes = [8, 32], strides = [1, 1]} : vector<32x32xbf16> to vector<8x32xbf16>
    %cst_41 = arith.constant dense<0.000000e+00> : vector<8x32xf32>
    %125 = tpu.matmul %123, %124, %cst_41 {dimension_numbers = #tpu.dot_dimension_numbers<[1], [0], [0], [1], [0, 0, 1, 1], [], []>} : vector<8x8xbf16>, vector<8x32xbf16>, vector<8x32xf32> -> vector<8x32xf32>
    %126 = arith.addf %104, %125 : vector<8x32xf32>
    %cst_42 = arith.constant 0.000000e+00 : bf16
    %127 = vector.broadcast %cst_42 : bf16 to vector<2x32xbf16>
    %128 = tpu.concatenate %127, %27 in 0 : vector<2x32xbf16>, vector<8x32xbf16> -> vector<10x32xbf16>
    %129 = vector.extract_strided_slice %128 {offsets = [0, 0], sizes = [8, 32], strides = [1, 1]} : vector<10x32xbf16> to vector<8x32xbf16>
    %130 = vector.extract_strided_slice %128 {offsets = [1, 0], sizes = [8, 32], strides = [1, 1]} : vector<10x32xbf16> to vector<8x32xbf16>
    %131 = vector.extract_strided_slice %128 {offsets = [2, 0], sizes = [8, 32], strides = [1, 1]} : vector<10x32xbf16> to vector<8x32xbf16>
    %132 = tpu.concatenate %129, %130, %131 in 1 : vector<8x32xbf16>, vector<8x32xbf16>, vector<8x32xbf16> -> vector<8x96xbf16>
    %c0_43 = arith.constant 0 : index
    %c0_44 = arith.constant 0 : index
    %133 = vector.load %arg7[%c0_43, %c0_44] : memref<96x32xbf16, #tpu.memory_space<vmem>>, vector<96x32xbf16>
    %cst_45 = arith.constant dense<0.000000e+00> : vector<8x32xf32>
    %134 = tpu.matmul %132, %133, %cst_45 {dimension_numbers = #tpu.dot_dimension_numbers<[1], [0], [0], [1], [0, 0, 1, 1], [], []>} : vector<8x96xbf16>, vector<96x32xbf16>, vector<8x32xf32> -> vector<8x32xf32>
    %c0_46 = arith.constant 0 : index
    %c0_47 = arith.constant 0 : index
    %135 = vector.load %arg8[%c0_46, %c0_47] : memref<1x32xf32, #tpu.memory_space<vmem>>, vector<1x32xf32>
    %136 = vector.broadcast %135 : vector<1x32xf32> to vector<8x32xf32>
    %137 = arith.addf %134, %136 : vector<8x32xf32>
    %138 = arith.addf %2, %126 : vector<8x32xf32>
    %139 = arith.addf %138, %137 : vector<8x32xf32>
    %c0_48 = arith.constant 0 : index
    %c0_49 = arith.constant 0 : index
    %140 = vector.load %arg9[%c0_48, %c0_49] : memref<1x32xf32, #tpu.memory_space<vmem>>, vector<1x32xf32>
    %c0_50 = arith.constant 0 : index
    %c0_51 = arith.constant 0 : index
    %141 = vector.load %arg10[%c0_50, %c0_51] : memref<1x32xf32, #tpu.memory_space<vmem>>, vector<1x32xf32>
    %cst_52 = arith.constant dense<0.000000e+00> : vector<8xf32>
    %142 = vector.multi_reduction <add>, %139, %cst_52 [1] : vector<8x32xf32> to vector<8xf32>
    %143 = vector.shape_cast %142 : vector<8xf32> to vector<8x1xf32>
    %cst_53 = arith.constant 3.200000e+01 : f32
    %144 = vector.broadcast %cst_53 : f32 to vector<8x1xf32>
    %145 = arith.divf %143, %144 : vector<8x1xf32>
    %146 = vector.broadcast %145 : vector<8x1xf32> to vector<8x32xf32>
    %147 = arith.subf %139, %146 : vector<8x32xf32>
    %148 = arith.mulf %147, %147 : vector<8x32xf32>
    %cst_54 = arith.constant dense<0.000000e+00> : vector<8xf32>
    %149 = vector.multi_reduction <add>, %148, %cst_54 [1] : vector<8x32xf32> to vector<8xf32>
    %150 = vector.shape_cast %149 : vector<8xf32> to vector<8x1xf32>
    %cst_55 = arith.constant 3.200000e+01 : f32
    %151 = vector.broadcast %cst_55 : f32 to vector<8x1xf32>
    %152 = arith.divf %150, %151 : vector<8x1xf32>
    %153 = vector.broadcast %145 : vector<8x1xf32> to vector<8x32xf32>
    %154 = arith.subf %139, %153 : vector<8x32xf32>
    %cst_56 = arith.constant 9.99999974E-6 : f32
    %155 = vector.broadcast %cst_56 : f32 to vector<8x1xf32>
    %156 = arith.addf %152, %155 : vector<8x1xf32>
    %157 = math.rsqrt %156 : vector<8x1xf32>
    %158 = vector.broadcast %157 : vector<8x1xf32> to vector<8x32xf32>
    %159 = arith.mulf %154, %158 : vector<8x32xf32>
    %160 = vector.broadcast %140 : vector<1x32xf32> to vector<8x32xf32>
    %161 = arith.mulf %159, %160 : vector<8x32xf32>
    %162 = vector.broadcast %141 : vector<1x32xf32> to vector<8x32xf32>
    %163 = arith.addf %161, %162 : vector<8x32xf32>
    %164 = arith.truncf %163 : vector<8x32xf32> to vector<8x32xbf16>
    %c0_57 = arith.constant 0 : index
    %c0_58 = arith.constant 0 : index
    %165 = vector.load %arg11[%c0_57, %c0_58] : memref<32x128xbf16, #tpu.memory_space<vmem>>, vector<32x128xbf16>
    %cst_59 = arith.constant dense<0.000000e+00> : vector<8x128xf32>
    %166 = tpu.matmul %164, %165, %cst_59 {dimension_numbers = #tpu.dot_dimension_numbers<[1], [0], [0], [1], [0, 0, 1, 1], [], []>} : vector<8x32xbf16>, vector<32x128xbf16>, vector<8x128xf32> -> vector<8x128xf32>
    %c0_60 = arith.constant 0 : index
    %c0_61 = arith.constant 0 : index
    %167 = vector.load %arg12[%c0_60, %c0_61] : memref<1x128xf32, #tpu.memory_space<vmem>>, vector<1x128xf32>
    %168 = vector.broadcast %167 : vector<1x128xf32> to vector<8x128xf32>
    %169 = arith.addf %166, %168 : vector<8x128xf32>
    %cst_62 = arith.constant 0.000000e+00 : f32
    %170 = vector.broadcast %cst_62 : f32 to vector<8x128xf32>
    %171 = arith.maximumf %169, %170 : vector<8x128xf32>
    %172 = arith.truncf %171 : vector<8x128xf32> to vector<8x128xbf16>
    %c0_63 = arith.constant 0 : index
    %c0_64 = arith.constant 0 : index
    %173 = vector.load %arg13[%c0_63, %c0_64] : memref<128x32xbf16, #tpu.memory_space<vmem>>, vector<128x32xbf16>
    %cst_65 = arith.constant dense<0.000000e+00> : vector<8x32xf32>
    %174 = tpu.matmul %172, %173, %cst_65 {dimension_numbers = #tpu.dot_dimension_numbers<[1], [0], [0], [1], [0, 0, 1, 1], [], []>} : vector<8x128xbf16>, vector<128x32xbf16>, vector<8x32xf32> -> vector<8x32xf32>
    %c0_66 = arith.constant 0 : index
    %c0_67 = arith.constant 0 : index
    %175 = vector.load %arg14[%c0_66, %c0_67] : memref<1x32xf32, #tpu.memory_space<vmem>>, vector<1x32xf32>
    %176 = vector.broadcast %175 : vector<1x32xf32> to vector<8x32xf32>
    %177 = arith.addf %174, %176 : vector<8x32xf32>
    %178 = arith.addf %139, %177 : vector<8x32xf32>
    %179 = arith.truncf %178 : vector<8x32xf32> to vector<8x32xbf16>
    %c0_68 = arith.constant 0 : index
    %c0_69 = arith.constant 0 : index
    %c0_70 = arith.constant 0 : index
    %180 = vector.load %arg17[%c0_68, %c0_69, %c0_70] : memref<1x8x32xbf16, #tpu.memory_space<vmem>>, vector<1x8x32xbf16>
    %181 = vector.shape_cast %180 : vector<1x8x32xbf16> to vector<8x32xbf16>
    %182 = vector.shape_cast %179 : vector<8x32xbf16> to vector<1x8x32xbf16>
    tpu.vector_store %arg17[%c0_68, %c0_69, %c0_70], %182 {strides = array<i32>} : memref<1x8x32xbf16, #tpu.memory_space<vmem>>, vector<1x8x32xbf16>,
    return
  }
  func.func @transform_0(%arg0: i32) -> (i32, i32, i32) {
    %c0_i32 = arith.constant 0 : i32
    %c0_i32_0 = arith.constant 0 : i32
    %c0_i32_1 = arith.constant 0 : i32
    return %arg0, %c0_i32, %c0_i32_0 : i32, i32, i32
  }
  func.func @transform_1(%arg0: i32) -> (i32, i32) {
    %c0_i32 = arith.constant 0 : i32
    %c0_i32_0 = arith.constant 0 : i32
    %c0_i32_1 = arith.constant 0 : i32
    return %c0_i32, %c0_i32_0 : i32, i32
  }
  func.func @transform_2(%arg0: i32) -> (i32, i32) {
    %c0_i32 = arith.constant 0 : i32
    %c0_i32_0 = arith.constant 0 : i32
    %c0_i32_1 = arith.constant 0 : i32
    return %c0_i32, %c0_i32_0 : i32, i32
  }
  func.func @transform_3(%arg0: i32) -> (i32, i32) {
    %c0_i32 = arith.constant 0 : i32
    %c0_i32_0 = arith.constant 0 : i32
    %c0_i32_1 = arith.constant 0 : i32
    return %c0_i32, %c0_i32_0 : i32, i32
  }
  func.func @transform_4(%arg0: i32) -> (i32, i32) {
    %c0_i32 = arith.constant 0 : i32
    %c0_i32_0 = arith.constant 0 : i32
    %c0_i32_1 = arith.constant 0 : i32
    return %c0_i32, %c0_i32_0 : i32, i32
  }
  func.func @transform_5(%arg0: i32) -> (i32, i32) {
    %c0_i32 = arith.constant 0 : i32
    %c0_i32_0 = arith.constant 0 : i32
    %c0_i32_1 = arith.constant 0 : i32
    return %c0_i32, %c0_i32_0 : i32, i32
  }
  func.func @transform_6(%arg0: i32) -> (i32, i32) {
    %c0_i32 = arith.constant 0 : i32
    %c0_i32_0 = arith.constant 0 : i32
    %c0_i32_1 = arith.constant 0 : i32
    return %c0_i32, %c0_i32_0 : i32, i32
  }
  func.func @transform_7(%arg0: i32) -> (i32, i32) {
    %c0_i32 = arith.constant 0 : i32
    %c0_i32_0 = arith.constant 0 : i32
    %c0_i32_1 = arith.constant 0 : i32
    return %c0_i32, %c0_i32_0 : i32, i32
  }
  func.func @transform_8(%arg0: i32) -> (i32, i32) {
    %c0_i32 = arith.constant 0 : i32
    %c0_i32_0 = arith.constant 0 : i32
    %c0_i32_1 = arith.constant 0 : i32
    return %c0_i32, %c0_i32_0 : i32, i32
  }
  func.func @transform_9(%arg0: i32) -> (i32, i32) {
    %c0_i32 = arith.constant 0 : i32
    %c0_i32_0 = arith.constant 0 : i32
    %c0_i32_1 = arith.constant 0 : i32
    return %c0_i32, %c0_i32_0 : i32, i32
  }
  func.func @transform_10(%arg0: i32) -> (i32, i32) {
    %c0_i32 = arith.constant 0 : i32
    %c0_i32_0 = arith.constant 0 : i32
    %c0_i32_1 = arith.constant 0 : i32
    return %c0_i32, %c0_i32_0 : i32, i32
  }
  func.func @transform_11(%arg0: i32) -> (i32, i32) {
    %c0_i32 = arith.constant 0 : i32
    %c0_i32_0 = arith.constant 0 : i32
    %c0_i32_1 = arith.constant 0 : i32
    return %c0_i32, %c0_i32_0 : i32, i32
  }
  func.func @transform_12(%arg0: i32) -> (i32, i32) {
    %c0_i32 = arith.constant 0 : i32
    %c0_i32_0 = arith.constant 0 : i32
    %c0_i32_1 = arith.constant 0 : i32
    return %c0_i32, %c0_i32_0 : i32, i32
  }
  func.func @transform_13(%arg0: i32) -> (i32, i32) {
    %c0_i32 = arith.constant 0 : i32
    %c0_i32_0 = arith.constant 0 : i32
    %c0_i32_1 = arith.constant 0 : i32
    return %c0_i32, %c0_i32_0 : i32, i32
  }
  func.func @transform_14(%arg0: i32) -> (i32, i32) {
    %c0_i32 = arith.constant 0 : i32
    %c0_i32_0 = arith.constant 0 : i32
    %c0_i32_1 = arith.constant 0 : i32
    return %c0_i32, %c0_i32_0 : i32, i32
  }
  func.func @transform_15(%arg0: i32) -> (i32, i32) {
    %c0_i32 = arith.constant 0 : i32
    %c0_i32_0 = arith.constant 0 : i32
    %c0_i32_1 = arith.constant 0 : i32
    return %c0_i32, %c0_i32_0 : i32, i32
  }
  func.func @transform_16(%arg0: i32) -> (i32, i32, i32) {
    %c0_i32 = arith.constant 0 : i32
    %c0_i32_0 = arith.constant 0 : i32
    %c0_i32_1 = arith.constant 0 : i32
    return %arg0, %c0_i32, %c0_i32_0 : i32, i32, i32
  }
}

module attributes {stable_mosaic.version = 11 : i64} {
  func.func @block_kernel(%arg0: i32, %arg1: memref<1x8x32xbf16, #tpu.memory_space<vmem>>, %arg2: memref<1x32xf32, #tpu.memory_space<vmem>>, %arg3: memref<1x32xf32, #tpu.memory_space<vmem>>, %arg4: memref<32x96xbf16, #tpu.memory_space<vmem>>, %arg5: memref<32x32xbf16, #tpu.memory_space<vmem>>, %arg6: memref<1x32xf32, #tpu.memory_space<vmem>>, %arg7: memref<96x32xbf16, #tpu.memory_space<vmem>>, %arg8: memref<1x32xf32, #tpu.memory_space<vmem>>, %arg9: memref<1x32xf32, #tpu.memory_space<vmem>>, %arg10: memref<1x32xf32, #tpu.memory_space<vmem>>, %arg11: memref<32x128xbf16, #tpu.memory_space<vmem>>, %arg12: memref<1x128xf32, #tpu.memory_space<vmem>>, %arg13: memref<128x32xbf16, #tpu.memory_space<vmem>>, %arg14: memref<1x32xf32, #tpu.memory_space<vmem>>, %arg15: memref<1x32xf32, #tpu.memory_space<vmem>>, %arg16: memref<1x32xf32, #tpu.memory_space<vmem>>, %arg17: memref<1x8x32xbf16, #tpu.memory_space<vmem>>) attributes {dimension_semantics = [#tpu.dimension_semantics<parallel>], iteration_bounds = array<i64: 2>, scalar_prefetch = 0 : i64, scratch_operands = 0 : i64, tpu.core_type = #tpu.core_type<tc>, window_params = [{transform_indices = @transform_0, window_bounds = array<i64: 1, 8, 32>}, {pipeline_mode = #tpu.pipeline_mode<synchronous>, transform_indices = @transform_1, window_bounds = array<i64: 1, 32>}, {pipeline_mode = #tpu.pipeline_mode<synchronous>, transform_indices = @transform_2, window_bounds = array<i64: 1, 32>}, {pipeline_mode = #tpu.pipeline_mode<synchronous>, transform_indices = @transform_3, window_bounds = array<i64: 32, 96>}, {pipeline_mode = #tpu.pipeline_mode<synchronous>, transform_indices = @transform_4, window_bounds = array<i64: 32, 32>}, {pipeline_mode = #tpu.pipeline_mode<synchronous>, transform_indices = @transform_5, window_bounds = array<i64: 1, 32>}, {pipeline_mode = #tpu.pipeline_mode<synchronous>, transform_indices = @transform_6, window_bounds = array<i64: 96, 32>}, {pipeline_mode = #tpu.pipeline_mode<synchronous>, transform_indices = @transform_7, window_bounds = array<i64: 1, 32>}, {pipeline_mode = #tpu.pipeline_mode<synchronous>, transform_indices = @transform_8, window_bounds = array<i64: 1, 32>}, {pipeline_mode = #tpu.pipeline_mode<synchronous>, transform_indices = @transform_9, window_bounds = array<i64: 1, 32>}, {pipeline_mode = #tpu.pipeline_mode<synchronous>, transform_indices = @transform_10, window_bounds = array<i64: 32, 128>}, {pipeline_mode = #tpu.pipeline_mode<synchronous>, transform_indices = @transform_11, window_bounds = array<i64: 1, 128>}, {pipeline_mode = #tpu.pipeline_mode<synchronous>, transform_indices = @transform_12, window_bounds = array<i64: 128, 32>}, {pipeline_mode = #tpu.pipeline_mode<synchronous>, transform_indices = @transform_13, window_bounds = array<i64: 1, 32>}, {pipeline_mode = #tpu.pipeline_mode<synchronous>, transform_indices = @transform_14, window_bounds = array<i64: 1, 32>}, {pipeline_mode = #tpu.pipeline_mode<synchronous>, transform_indices = @transform_15, window_bounds = array<i64: 1, 32>}, {transform_indices = @transform_16, window_bounds = array<i64: 1, 8, 32>}]} {
    %c0 = arith.constant 0 : index
    %c0_0 = arith.constant 0 : index
    %c0_1 = arith.constant 0 : index
    %0 = vector.load %arg1[%c0, %c0_0, %c0_1] : memref<1x8x32xbf16, #tpu.memory_space<vmem>>, vector<1x8x32xbf16>
    %1 = vector.shape_cast %0 : vector<1x8x32xbf16> to vector<8x32xbf16>
    %2 = arith.extf %1 : vector<8x32xbf16> to vector<8x32xf32>
    %c0_2 = arith.constant 0 : index
    %c0_3 = arith.constant 0 : index
    %3 = vector.load %arg2[%c0_2, %c0_3] : memref<1x32xf32, #tpu.memory_space<vmem>>, vector<1x32xf32>
    %c0_4 = arith.constant 0 : index
    %c0_5 = arith.constant 0 : index
    %4 = vector.load %arg3[%c0_4, %c0_5] : memref<1x32xf32, #tpu.memory_space<vmem>>, vector<1x32xf32>
    %cst = arith.constant dense<0.000000e+00> : vector<8xf32>
    %5 = vector.multi_reduction <add>, %2, %cst [1] : vector<8x32xf32> to vector<8xf32>
    %6 = vector.shape_cast %5 : vector<8xf32> to vector<8x1xf32>
    %cst_6 = arith.constant 3.200000e+01 : f32
    %7 = vector.broadcast %cst_6 : f32 to vector<8x1xf32>
    %8 = arith.divf %6, %7 : vector<8x1xf32>
    %9 = vector.broadcast %8 : vector<8x1xf32> to vector<8x32xf32>
    %10 = arith.subf %2, %9 : vector<8x32xf32>
    %11 = arith.mulf %10, %10 : vector<8x32xf32>
    %cst_7 = arith.constant dense<0.000000e+00> : vector<8xf32>
    %12 = vector.multi_reduction <add>, %11, %cst_7 [1] : vector<8x32xf32> to vector<8xf32>
    %13 = vector.shape_cast %12 : vector<8xf32> to vector<8x1xf32>
    %cst_8 = arith.constant 3.200000e+01 : f32
    %14 = vector.broadcast %cst_8 : f32 to vector<8x1xf32>
    %15 = arith.divf %13, %14 : vector<8x1xf32>
    %16 = vector.broadcast %8 : vector<8x1xf32> to vector<8x32xf32>
    %17 = arith.subf %2, %16 : vector<8x32xf32>
    %cst_9 = arith.constant 9.99999974E-6 : f32
    %18 = vector.broadcast %cst_9 : f32 to vector<8x1xf32>
    %19 = arith.addf %15, %18 : vector<8x1xf32>
    %20 = math.rsqrt %19 : vector<8x1xf32>
    %21 = vector.broadcast %20 : vector<8x1xf32> to vector<8x32xf32>
    %22 = arith.mulf %17, %21 : vector<8x32xf32>
    %23 = vector.broadcast %3 : vector<1x32xf32> to vector<8x32xf32>
    %24 = arith.mulf %22, %23 : vector<8x32xf32>
    %25 = vector.broadcast %4 : vector<1x32xf32> to vector<8x32xf32>
    %26 = arith.addf %24, %25 : vector<8x32xf32>
    %27 = arith.truncf %26 : vector<8x32xf32> to vector<8x32xbf16>
    %c0_10 = arith.constant 0 : index
    %c0_11 = arith.constant 0 : index
    %28 = vector.load %arg4[%c0_10, %c0_11] : memref<32x96xbf16, #tpu.memory_space<vmem>>, vector<32x96xbf16>
    %cst_12 = arith.constant dense<0.000000e+00> : vector<8x96xf32>
    %29 = tpu.matmul %27, %28, %cst_12 {dimension_numbers = #tpu.dot_dimension_numbers<[1], [0], [0], [1], [0, 0, 1, 1], [], []>} : vector<8x32xbf16>, vector<32x96xbf16>, vector<8x96xf32> -> vector<8x96xf32>
    %30 = arith.truncf %29 : vector<8x96xf32> to vector<8x96xbf16>
    %31 = tpu.iota {dimensions = array<i32: 0>} : vector<8x8xi32>
    %32 = tpu.iota {dimensions = array<i32: 1>} : vector<8x8xi32>
    %33 = arith.cmpi sle, %32, %31 : vector<8x8xi32>
    %c0_13 = arith.constant 0 : index
    %c0_14 = arith.constant 0 : index
    %34 = vector.load %arg5[%c0_13, %c0_14] : memref<32x32xbf16, #tpu.memory_space<vmem>>, vector<32x32xbf16>
    %cst_15 = arith.constant 0.000000e+00 : f32
    %35 = vector.broadcast %cst_15 : f32 to vector<8x32xf32>
    %c0_16 = arith.constant 0 : index
    %c0_17 = arith.constant 0 : index
    %36 = vector.load %arg6[%c0_16, %c0_17] : memref<1x32xf32, #tpu.memory_space<vmem>>, vector<1x32xf32>
    %37 = vector.broadcast %36 : vector<1x32xf32> to vector<8x32xf32>
    %38 = arith.addf %35, %37 : vector<8x32xf32>
    %39 = vector.extract_strided_slice %30 {offsets = [0, 0], sizes = [8, 8], strides = [1, 1]} : vector<8x96xbf16> to vector<8x8xbf16>
    %40 = vector.extract_strided_slice %30 {offsets = [0, 32], sizes = [8, 8], strides = [1, 1]} : vector<8x96xbf16> to vector<8x8xbf16>
    %41 = vector.extract_strided_slice %30 {offsets = [0, 64], sizes = [8, 8], strides = [1, 1]} : vector<8x96xbf16> to vector<8x8xbf16>
    %cst_18 = arith.constant dense<0.000000e+00> : vector<8x8xf32>
    %42 = tpu.matmul %39, %40, %cst_18 {dimension_numbers = #tpu.dot_dimension_numbers<[1], [1], [0], [0], [0, 0, 1, 0], [], []>} : vector<8x8xbf16>, vector<8x8xbf16>, vector<8x8xf32> -> vector<8x8xf32>
    %cst_19 = arith.constant 0xFF800000 : f32
    %43 = vector.broadcast %cst_19 : f32 to vector<8x8xf32>
    %44 = arith.select %33, %42, %43 : vector<8x8xi1>, vector<8x8xf32>
    %cst_20 = arith.constant dense<0xFF800000> : vector<8xf32>
    %45 = vector.multi_reduction <maximumf>, %44, %cst_20 [1] : vector<8x8xf32> to vector<8xf32>
    %46 = vector.shape_cast %45 : vector<8xf32> to vector<8x1xf32>
    %47 = vector.broadcast %46 : vector<8x1xf32> to vector<8x8xf32>
    %48 = arith.subf %44, %47 : vector<8x8xf32>
    %49 = math.exp %48 : vector<8x8xf32>
    %cst_21 = arith.constant dense<0.000000e+00> : vector<8xf32>
    %50 = vector.multi_reduction <add>, %49, %cst_21 [1] : vector<8x8xf32> to vector<8xf32>
    %51 = vector.shape_cast %50 : vector<8xf32> to vector<8x1xf32>
    %52 = tpu.reciprocal %51 {approx = true} : vector<8x1xf32> -> vector<8x1xf32>
    %53 = vector.broadcast %52 : vector<8x1xf32> to vector<8x8xf32>
    %54 = arith.mulf %49, %53 : vector<8x8xf32>
    %55 = arith.truncf %54 : vector<8x8xf32> to vector<8x8xbf16>
    %cst_22 = arith.constant dense<0.000000e+00> : vector<8x8xf32>
    %56 = tpu.matmul %55, %41, %cst_22 {dimension_numbers = #tpu.dot_dimension_numbers<[1], [0], [0], [1], [0, 0, 1, 1], [], []>} : vector<8x8xbf16>, vector<8x8xbf16>, vector<8x8xf32> -> vector<8x8xf32>
    %57 = arith.truncf %56 : vector<8x8xf32> to vector<8x8xbf16>
    %58 = vector.extract_strided_slice %34 {offsets = [0, 0], sizes = [8, 32], strides = [1, 1]} : vector<32x32xbf16> to vector<8x32xbf16>
    %cst_23 = arith.constant dense<0.000000e+00> : vector<8x32xf32>
    %59 = tpu.matmul %57, %58, %cst_23 {dimension_numbers = #tpu.dot_dimension_numbers<[1], [0], [0], [1], [0, 0, 1, 1], [], []>} : vector<8x8xbf16>, vector<8x32xbf16>, vector<8x32xf32> -> vector<8x32xf32>
    %60 = arith.addf %38, %59 : vector<8x32xf32>
    %61 = vector.extract_strided_slice %30 {offsets = [0, 8], sizes = [8, 8], strides = [1, 1]} : vector<8x96xbf16> to vector<8x8xbf16>
    %62 = vector.extract_strided_slice %30 {offsets = [0, 40], sizes = [8, 8], strides = [1, 1]} : vector<8x96xbf16> to vector<8x8xbf16>
    %63 = vector.extract_strided_slice %30 {offsets = [0, 72], sizes = [8, 8], strides = [1, 1]} : vector<8x96xbf16> to vector<8x8xbf16>
    %cst_24 = arith.constant dense<0.000000e+00> : vector<8x8xf32>
    %64 = tpu.matmul %61, %62, %cst_24 {dimension_numbers = #tpu.dot_dimension_numbers<[1], [1], [0], [0], [0, 0, 1, 0], [], []>} : vector<8x8xbf16>, vector<8x8xbf16>, vector<8x8xf32> -> vector<8x8xf32>
    %cst_25 = arith.constant 0xFF800000 : f32
    %65 = vector.broadcast %cst_25 : f32 to vector<8x8xf32>
    %66 = arith.select %33, %64, %65 : vector<8x8xi1>, vector<8x8xf32>
    %cst_26 = arith.constant dense<0xFF800000> : vector<8xf32>
    %67 = vector.multi_reduction <maximumf>, %66, %cst_26 [1] : vector<8x8xf32> to vector<8xf32>
    %68 = vector.shape_cast %67 : vector<8xf32> to vector<8x1xf32>
    %69 = vector.broadcast %68 : vector<8x1xf32> to vector<8x8xf32>
    %70 = arith.subf %66, %69 : vector<8x8xf32>
    %71 = math.exp %70 : vector<8x8xf32>
    %cst_27 = arith.constant dense<0.000000e+00> : vector<8xf32>
    %72 = vector.multi_reduction <add>, %71, %cst_27 [1] : vector<8x8xf32> to vector<8xf32>
    %73 = vector.shape_cast %72 : vector<8xf32> to vector<8x1xf32>
    %74 = tpu.reciprocal %73 {approx = true} : vector<8x1xf32> -> vector<8x1xf32>
    %75 = vector.broadcast %74 : vector<8x1xf32> to vector<8x8xf32>
    %76 = arith.mulf %71, %75 : vector<8x8xf32>
    %77 = arith.truncf %76 : vector<8x8xf32> to vector<8x8xbf16>
    %cst_28 = arith.constant dense<0.000000e+00> : vector<8x8xf32>
    %78 = tpu.matmul %77, %63, %cst_28 {dimension_numbers = #tpu.dot_dimension_numbers<[1], [0], [0], [1], [0, 0, 1, 1], [], []>} : vector<8x8xbf16>, vector<8x8xbf16>, vector<8x8xf32> -> vector<8x8xf32>
    %79 = arith.truncf %78 : vector<8x8xf32> to vector<8x8xbf16>
    %80 = vector.extract_strided_slice %34 {offsets = [8, 0], sizes = [8, 32], strides = [1, 1]} : vector<32x32xbf16> to vector<8x32xbf16>
    %cst_29 = arith.constant dense<0.000000e+00> : vector<8x32xf32>
    %81 = tpu.matmul %79, %80, %cst_29 {dimension_numbers = #tpu.dot_dimension_numbers<[1], [0], [0], [1], [0, 0, 1, 1], [], []>} : vector<8x8xbf16>, vector<8x32xbf16>, vector<8x32xf32> -> vector<8x32xf32>
    %82 = arith.addf %60, %81 : vector<8x32xf32>
    %83 = vector.extract_strided_slice %30 {offsets = [0, 16], sizes = [8, 8], strides = [1, 1]} : vector<8x96xbf16> to vector<8x8xbf16>
    %84 = vector.extract_strided_slice %30 {offsets = [0, 48], sizes = [8, 8], strides = [1, 1]} : vector<8x96xbf16> to vector<8x8xbf16>
    %85 = vector.extract_strided_slice %30 {offsets = [0, 80], sizes = [8, 8], strides = [1, 1]} : vector<8x96xbf16> to vector<8x8xbf16>
    %cst_30 = arith.constant dense<0.000000e+00> : vector<8x8xf32>
    %86 = tpu.matmul %83, %84, %cst_30 {dimension_numbers = #tpu.dot_dimension_numbers<[1], [1], [0], [0], [0, 0, 1, 0], [], []>} : vector<8x8xbf16>, vector<8x8xbf16>, vector<8x8xf32> -> vector<8x8xf32>
    %cst_31 = arith.constant 0xFF800000 : f32
    %87 = vector.broadcast %cst_31 : f32 to vector<8x8xf32>
    %88 = arith.select %33, %86, %87 : vector<8x8xi1>, vector<8x8xf32>
    %cst_32 = arith.constant dense<0xFF800000> : vector<8xf32>
    %89 = vector.multi_reduction <maximumf>, %88, %cst_32 [1] : vector<8x8xf32> to vector<8xf32>
    %90 = vector.shape_cast %89 : vector<8xf32> to vector<8x1xf32>
    %91 = vector.broadcast %90 : vector<8x1xf32> to vector<8x8xf32>
    %92 = arith.subf %88, %91 : vector<8x8xf32>
    %93 = math.exp %92 : vector<8x8xf32>
    %cst_33 = arith.constant dense<0.000000e+00> : vector<8xf32>
    %94 = vector.multi_reduction <add>, %93, %cst_33 [1] : vector<8x8xf32> to vector<8xf32>
    %95 = vector.shape_cast %94 : vector<8xf32> to vector<8x1xf32>
    %96 = tpu.reciprocal %95 {approx = true} : vector<8x1xf32> -> vector<8x1xf32>
    %97 = vector.broadcast %96 : vector<8x1xf32> to vector<8x8xf32>
    %98 = arith.mulf %93, %97 : vector<8x8xf32>
    %99 = arith.truncf %98 : vector<8x8xf32> to vector<8x8xbf16>
    %cst_34 = arith.constant dense<0.000000e+00> : vector<8x8xf32>
    %100 = tpu.matmul %99, %85, %cst_34 {dimension_numbers = #tpu.dot_dimension_numbers<[1], [0], [0], [1], [0, 0, 1, 1], [], []>} : vector<8x8xbf16>, vector<8x8xbf16>, vector<8x8xf32> -> vector<8x8xf32>
    %101 = arith.truncf %100 : vector<8x8xf32> to vector<8x8xbf16>
    %102 = vector.extract_strided_slice %34 {offsets = [16, 0], sizes = [8, 32], strides = [1, 1]} : vector<32x32xbf16> to vector<8x32xbf16>
    %cst_35 = arith.constant dense<0.000000e+00> : vector<8x32xf32>
    %103 = tpu.matmul %101, %102, %cst_35 {dimension_numbers = #tpu.dot_dimension_numbers<[1], [0], [0], [1], [0, 0, 1, 1], [], []>} : vector<8x8xbf16>, vector<8x32xbf16>, vector<8x32xf32> -> vector<8x32xf32>
    %104 = arith.addf %82, %103 : vector<8x32xf32>
    %105 = vector.extract_strided_slice %30 {offsets = [0, 24], sizes = [8, 8], strides = [1, 1]} : vector<8x96xbf16> to vector<8x8xbf16>
    %106 = vector.extract_strided_slice %30 {offsets = [0, 56], sizes = [8, 8], strides = [1, 1]} : vector<8x96xbf16> to vector<8x8xbf16>
    %107 = vector.extract_strided_slice %30 {offsets = [0, 88], sizes = [8, 8], strides = [1, 1]} : vector<8x96xbf16> to vector<8x8xbf16>
    %cst_36 = arith.constant dense<0.000000e+00> : vector<8x8xf32>
    %108 = tpu.matmul %105, %106, %cst_36 {dimension_numbers = #tpu.dot_dimension_numbers<[1], [1], [0], [0], [0, 0, 1, 0], [], []>} : vector<8x8xbf16>, vector<8x8xbf16>, vector<8x8xf32> -> vector<8x8xf32>
    %cst_37 = arith.constant 0xFF800000 : f32
    %109 = vector.broadcast %cst_37 : f32 to vector<8x8xf32>
    %110 = arith.select %33, %108, %109 : vector<8x8xi1>, vector<8x8xf32>
    %cst_38 = arith.constant dense<0xFF800000> : vector<8xf32>
    %111 = vector.multi_reduction <maximumf>, %110, %cst_38 [1] : vector<8x8xf32> to vector<8xf32>
    %112 = vector.shape_cast %111 : vector<8xf32> to vector<8x1xf32>
    %113 = vector.broadcast %112 : vector<8x1xf32> to vector<8x8xf32>
    %114 = arith.subf %110, %113 : vector<8x8xf32>
    %115 = math.exp %114 : vector<8x8xf32>
    %cst_39 = arith.constant dense<0.000000e+00> : vector<8xf32>
    %116 = vector.multi_reduction <add>, %115, %cst_39 [1] : vector<8x8xf32> to vector<8xf32>
    %117 = vector.shape_cast %116 : vector<8xf32> to vector<8x1xf32>
    %118 = tpu.reciprocal %117 {approx = true} : vector<8x1xf32> -> vector<8x1xf32>
    %119 = vector.broadcast %118 : vector<8x1xf32> to vector<8x8xf32>
    %120 = arith.mulf %115, %119 : vector<8x8xf32>
    %121 = arith.truncf %120 : vector<8x8xf32> to vector<8x8xbf16>
    %cst_40 = arith.constant dense<0.000000e+00> : vector<8x8xf32>
    %122 = tpu.matmul %121, %107, %cst_40 {dimension_numbers = #tpu.dot_dimension_numbers<[1], [0], [0], [1], [0, 0, 1, 1], [], []>} : vector<8x8xbf16>, vector<8x8xbf16>, vector<8x8xf32> -> vector<8x8xf32>
    %123 = arith.truncf %122 : vector<8x8xf32> to vector<8x8xbf16>
    %124 = vector.extract_strided_slice %34 {offsets = [24, 0], sizes = [8, 32], strides = [1, 1]} : vector<32x32xbf16> to vector<8x32xbf16>
    %cst_41 = arith.constant dense<0.000000e+00> : vector<8x32xf32>
    %125 = tpu.matmul %123, %124, %cst_41 {dimension_numbers = #tpu.dot_dimension_numbers<[1], [0], [0], [1], [0, 0, 1, 1], [], []>} : vector<8x8xbf16>, vector<8x32xbf16>, vector<8x32xf32> -> vector<8x32xf32>
    %126 = arith.addf %104, %125 : vector<8x32xf32>
    %cst_42 = arith.constant 0.000000e+00 : bf16
    %127 = vector.broadcast %cst_42 : bf16 to vector<4x32xbf16>
    %128 = tpu.concatenate %127, %27 in 0 : vector<4x32xbf16>, vector<8x32xbf16> -> vector<12x32xbf16>
    %129 = vector.extract_strided_slice %128 {offsets = [0, 0], sizes = [8, 32], strides = [1, 1]} : vector<12x32xbf16> to vector<8x32xbf16>
    %130 = vector.extract_strided_slice %128 {offsets = [2, 0], sizes = [8, 32], strides = [1, 1]} : vector<12x32xbf16> to vector<8x32xbf16>
    %131 = vector.extract_strided_slice %128 {offsets = [4, 0], sizes = [8, 32], strides = [1, 1]} : vector<12x32xbf16> to vector<8x32xbf16>
    %132 = tpu.concatenate %129, %130, %131 in 1 : vector<8x32xbf16>, vector<8x32xbf16>, vector<8x32xbf16> -> vector<8x96xbf16>
    %c0_43 = arith.constant 0 : index
    %c0_44 = arith.constant 0 : index
    %133 = vector.load %arg7[%c0_43, %c0_44] : memref<96x32xbf16, #tpu.memory_space<vmem>>, vector<96x32xbf16>
    %cst_45 = arith.constant dense<0.000000e+00> : vector<8x32xf32>
    %134 = tpu.matmul %132, %133, %cst_45 {dimension_numbers = #tpu.dot_dimension_numbers<[1], [0], [0], [1], [0, 0, 1, 1], [], []>} : vector<8x96xbf16>, vector<96x32xbf16>, vector<8x32xf32> -> vector<8x32xf32>
    %c0_46 = arith.constant 0 : index
    %c0_47 = arith.constant 0 : index
    %135 = vector.load %arg8[%c0_46, %c0_47] : memref<1x32xf32, #tpu.memory_space<vmem>>, vector<1x32xf32>
    %136 = vector.broadcast %135 : vector<1x32xf32> to vector<8x32xf32>
    %137 = arith.addf %134, %136 : vector<8x32xf32>
    %138 = arith.addf %2, %126 : vector<8x32xf32>
    %139 = arith.addf %138, %137 : vector<8x32xf32>
    %c0_48 = arith.constant 0 : index
    %c0_49 = arith.constant 0 : index
    %140 = vector.load %arg9[%c0_48, %c0_49] : memref<1x32xf32, #tpu.memory_space<vmem>>, vector<1x32xf32>
    %c0_50 = arith.constant 0 : index
    %c0_51 = arith.constant 0 : index
    %141 = vector.load %arg10[%c0_50, %c0_51] : memref<1x32xf32, #tpu.memory_space<vmem>>, vector<1x32xf32>
    %cst_52 = arith.constant dense<0.000000e+00> : vector<8xf32>
    %142 = vector.multi_reduction <add>, %139, %cst_52 [1] : vector<8x32xf32> to vector<8xf32>
    %143 = vector.shape_cast %142 : vector<8xf32> to vector<8x1xf32>
    %cst_53 = arith.constant 3.200000e+01 : f32
    %144 = vector.broadcast %cst_53 : f32 to vector<8x1xf32>
    %145 = arith.divf %143, %144 : vector<8x1xf32>
    %146 = vector.broadcast %145 : vector<8x1xf32> to vector<8x32xf32>
    %147 = arith.subf %139, %146 : vector<8x32xf32>
    %148 = arith.mulf %147, %147 : vector<8x32xf32>
    %cst_54 = arith.constant dense<0.000000e+00> : vector<8xf32>
    %149 = vector.multi_reduction <add>, %148, %cst_54 [1] : vector<8x32xf32> to vector<8xf32>
    %150 = vector.shape_cast %149 : vector<8xf32> to vector<8x1xf32>
    %cst_55 = arith.constant 3.200000e+01 : f32
    %151 = vector.broadcast %cst_55 : f32 to vector<8x1xf32>
    %152 = arith.divf %150, %151 : vector<8x1xf32>
    %153 = vector.broadcast %145 : vector<8x1xf32> to vector<8x32xf32>
    %154 = arith.subf %139, %153 : vector<8x32xf32>
    %cst_56 = arith.constant 9.99999974E-6 : f32
    %155 = vector.broadcast %cst_56 : f32 to vector<8x1xf32>
    %156 = arith.addf %152, %155 : vector<8x1xf32>
    %157 = math.rsqrt %156 : vector<8x1xf32>
    %158 = vector.broadcast %157 : vector<8x1xf32> to vector<8x32xf32>
    %159 = arith.mulf %154, %158 : vector<8x32xf32>
    %160 = vector.broadcast %140 : vector<1x32xf32> to vector<8x32xf32>
    %161 = arith.mulf %159, %160 : vector<8x32xf32>
    %162 = vector.broadcast %141 : vector<1x32xf32> to vector<8x32xf32>
    %163 = arith.addf %161, %162 : vector<8x32xf32>
    %164 = arith.truncf %163 : vector<8x32xf32> to vector<8x32xbf16>
    %c0_57 = arith.constant 0 : index
    %c0_58 = arith.constant 0 : index
    %165 = vector.load %arg11[%c0_57, %c0_58] : memref<32x128xbf16, #tpu.memory_space<vmem>>, vector<32x128xbf16>
    %cst_59 = arith.constant dense<0.000000e+00> : vector<8x128xf32>
    %166 = tpu.matmul %164, %165, %cst_59 {dimension_numbers = #tpu.dot_dimension_numbers<[1], [0], [0], [1], [0, 0, 1, 1], [], []>} : vector<8x32xbf16>, vector<32x128xbf16>, vector<8x128xf32> -> vector<8x128xf32>
    %c0_60 = arith.constant 0 : index
    %c0_61 = arith.constant 0 : index
    %167 = vector.load %arg12[%c0_60, %c0_61] : memref<1x128xf32, #tpu.memory_space<vmem>>, vector<1x128xf32>
    %168 = vector.broadcast %167 : vector<1x128xf32> to vector<8x128xf32>
    %169 = arith.addf %166, %168 : vector<8x128xf32>
    %cst_62 = arith.constant 0.000000e+00 : f32
    %170 = vector.broadcast %cst_62 : f32 to vector<8x128xf32>
    %171 = arith.maximumf %169, %170 : vector<8x128xf32>
    %172 = arith.truncf %171 : vector<8x128xf32> to vector<8x128xbf16>
    %c0_63 = arith.constant 0 : index
    %c0_64 = arith.constant 0 : index
    %173 = vector.load %arg13[%c0_63, %c0_64] : memref<128x32xbf16, #tpu.memory_space<vmem>>, vector<128x32xbf16>
    %cst_65 = arith.constant dense<0.000000e+00> : vector<8x32xf32>
    %174 = tpu.matmul %172, %173, %cst_65 {dimension_numbers = #tpu.dot_dimension_numbers<[1], [0], [0], [1], [0, 0, 1, 1], [], []>} : vector<8x128xbf16>, vector<128x32xbf16>, vector<8x32xf32> -> vector<8x32xf32>
    %c0_66 = arith.constant 0 : index
    %c0_67 = arith.constant 0 : index
    %175 = vector.load %arg14[%c0_66, %c0_67] : memref<1x32xf32, #tpu.memory_space<vmem>>, vector<1x32xf32>
    %176 = vector.broadcast %175 : vector<1x32xf32> to vector<8x32xf32>
    %177 = arith.addf %174, %176 : vector<8x32xf32>
    %178 = arith.addf %139, %177 : vector<8x32xf32>
    %c0_68 = arith.constant 0 : index
    %c0_69 = arith.constant 0 : index
    %179 = vector.load %arg15[%c0_68, %c0_69] : memref<1x32xf32, #tpu.memory_space<vmem>>, vector<1x32xf32>
    %c0_70 = arith.constant 0 : index
    %c0_71 = arith.constant 0 : index
    %180 = vector.load %arg16[%c0_70, %c0_71] : memref<1x32xf32, #tpu.memory_space<vmem>>, vector<1x32xf32>
    %cst_72 = arith.constant dense<0.000000e+00> : vector<8xf32>
    %181 = vector.multi_reduction <add>, %178, %cst_72 [1] : vector<8x32xf32> to vector<8xf32>
    %182 = vector.shape_cast %181 : vector<8xf32> to vector<8x1xf32>
    %cst_73 = arith.constant 3.200000e+01 : f32
    %183 = vector.broadcast %cst_73 : f32 to vector<8x1xf32>
    %184 = arith.divf %182, %183 : vector<8x1xf32>
    %185 = vector.broadcast %184 : vector<8x1xf32> to vector<8x32xf32>
    %186 = arith.subf %178, %185 : vector<8x32xf32>
    %187 = arith.mulf %186, %186 : vector<8x32xf32>
    %cst_74 = arith.constant dense<0.000000e+00> : vector<8xf32>
    %188 = vector.multi_reduction <add>, %187, %cst_74 [1] : vector<8x32xf32> to vector<8xf32>
    %189 = vector.shape_cast %188 : vector<8xf32> to vector<8x1xf32>
    %cst_75 = arith.constant 3.200000e+01 : f32
    %190 = vector.broadcast %cst_75 : f32 to vector<8x1xf32>
    %191 = arith.divf %189, %190 : vector<8x1xf32>
    %192 = vector.broadcast %184 : vector<8x1xf32> to vector<8x32xf32>
    %193 = arith.subf %178, %192 : vector<8x32xf32>
    %cst_76 = arith.constant 9.99999974E-6 : f32
    %194 = vector.broadcast %cst_76 : f32 to vector<8x1xf32>
    %195 = arith.addf %191, %194 : vector<8x1xf32>
    %196 = math.rsqrt %195 : vector<8x1xf32>
    %197 = vector.broadcast %196 : vector<8x1xf32> to vector<8x32xf32>
    %198 = arith.mulf %193, %197 : vector<8x32xf32>
    %199 = vector.broadcast %179 : vector<1x32xf32> to vector<8x32xf32>
    %200 = arith.mulf %198, %199 : vector<8x32xf32>
    %201 = vector.broadcast %180 : vector<1x32xf32> to vector<8x32xf32>
    %202 = arith.addf %200, %201 : vector<8x32xf32>
    %203 = arith.truncf %202 : vector<8x32xf32> to vector<8x32xbf16>
    %c0_77 = arith.constant 0 : index
    %c0_78 = arith.constant 0 : index
    %c0_79 = arith.constant 0 : index
    %204 = vector.load %arg17[%c0_77, %c0_78, %c0_79] : memref<1x8x32xbf16, #tpu.memory_space<vmem>>, vector<1x8x32xbf16>
    %205 = vector.shape_cast %204 : vector<1x8x32xbf16> to vector<8x32xbf16>
    %206 = vector.shape_cast %203 : vector<8x32xbf16> to vector<1x8x32xbf16>
    tpu.vector_store %arg17[%c0_77, %c0_78, %c0_79], %206 {strides = array<i32>} : memref<1x8x32xbf16, #tpu.memory_space<vmem>>, vector<1x8x32xbf16>,
    return
  }
  func.func @transform_0(%arg0: i32) -> (i32, i32, i32) {
    %c0_i32 = arith.constant 0 : i32
    %c0_i32_0 = arith.constant 0 : i32
    %c0_i32_1 = arith.constant 0 : i32
    return %arg0, %c0_i32, %c0_i32_0 : i32, i32, i32
  }
  func.func @transform_1(%arg0: i32) -> (i32, i32) {
    %c0_i32 = arith.constant 0 : i32
    %c0_i32_0 = arith.constant 0 : i32
    %c0_i32_1 = arith.constant 0 : i32
    return %c0_i32, %c0_i32_0 : i32, i32
  }
  func.func @transform_2(%arg0: i32) -> (i32, i32) {
    %c0_i32 = arith.constant 0 : i32
    %c0_i32_0 = arith.constant 0 : i32
    %c0_i32_1 = arith.constant 0 : i32
    return %c0_i32, %c0_i32_0 : i32, i32
  }
  func.func @transform_3(%arg0: i32) -> (i32, i32) {
    %c0_i32 = arith.constant 0 : i32
    %c0_i32_0 = arith.constant 0 : i32
    %c0_i32_1 = arith.constant 0 : i32
    return %c0_i32, %c0_i32_0 : i32, i32
  }
  func.func @transform_4(%arg0: i32) -> (i32, i32) {
    %c0_i32 = arith.constant 0 : i32
    %c0_i32_0 = arith.constant 0 : i32
    %c0_i32_1 = arith.constant 0 : i32
    return %c0_i32, %c0_i32_0 : i32, i32
  }
  func.func @transform_5(%arg0: i32) -> (i32, i32) {
    %c0_i32 = arith.constant 0 : i32
    %c0_i32_0 = arith.constant 0 : i32
    %c0_i32_1 = arith.constant 0 : i32
    return %c0_i32, %c0_i32_0 : i32, i32
  }
  func.func @transform_6(%arg0: i32) -> (i32, i32) {
    %c0_i32 = arith.constant 0 : i32
    %c0_i32_0 = arith.constant 0 : i32
    %c0_i32_1 = arith.constant 0 : i32
    return %c0_i32, %c0_i32_0 : i32, i32
  }
  func.func @transform_7(%arg0: i32) -> (i32, i32) {
    %c0_i32 = arith.constant 0 : i32
    %c0_i32_0 = arith.constant 0 : i32
    %c0_i32_1 = arith.constant 0 : i32
    return %c0_i32, %c0_i32_0 : i32, i32
  }
  func.func @transform_8(%arg0: i32) -> (i32, i32) {
    %c0_i32 = arith.constant 0 : i32
    %c0_i32_0 = arith.constant 0 : i32
    %c0_i32_1 = arith.constant 0 : i32
    return %c0_i32, %c0_i32_0 : i32, i32
  }
  func.func @transform_9(%arg0: i32) -> (i32, i32) {
    %c0_i32 = arith.constant 0 : i32
    %c0_i32_0 = arith.constant 0 : i32
    %c0_i32_1 = arith.constant 0 : i32
    return %c0_i32, %c0_i32_0 : i32, i32
  }
  func.func @transform_10(%arg0: i32) -> (i32, i32) {
    %c0_i32 = arith.constant 0 : i32
    %c0_i32_0 = arith.constant 0 : i32
    %c0_i32_1 = arith.constant 0 : i32
    return %c0_i32, %c0_i32_0 : i32, i32
  }
  func.func @transform_11(%arg0: i32) -> (i32, i32) {
    %c0_i32 = arith.constant 0 : i32
    %c0_i32_0 = arith.constant 0 : i32
    %c0_i32_1 = arith.constant 0 : i32
    return %c0_i32, %c0_i32_0 : i32, i32
  }
  func.func @transform_12(%arg0: i32) -> (i32, i32) {
    %c0_i32 = arith.constant 0 : i32
    %c0_i32_0 = arith.constant 0 : i32
    %c0_i32_1 = arith.constant 0 : i32
    return %c0_i32, %c0_i32_0 : i32, i32
  }
  func.func @transform_13(%arg0: i32) -> (i32, i32) {
    %c0_i32 = arith.constant 0 : i32
    %c0_i32_0 = arith.constant 0 : i32
    %c0_i32_1 = arith.constant 0 : i32
    return %c0_i32, %c0_i32_0 : i32, i32
  }
  func.func @transform_14(%arg0: i32) -> (i32, i32) {
    %c0_i32 = arith.constant 0 : i32
    %c0_i32_0 = arith.constant 0 : i32
    %c0_i32_1 = arith.constant 0 : i32
    return %c0_i32, %c0_i32_0 : i32, i32
  }
  func.func @transform_15(%arg0: i32) -> (i32, i32) {
    %c0_i32 = arith.constant 0 : i32
    %c0_i32_0 = arith.constant 0 : i32
    %c0_i32_1 = arith.constant 0 : i32
    return %c0_i32, %c0_i32_0 : i32, i32
  }
  func.func @transform_16(%arg0: i32) -> (i32, i32, i32) {
    %c0_i32 = arith.constant 0 : i32
    %c0_i32_0 = arith.constant 0 : i32
    %c0_i32_1 = arith.constant 0 : i32
    return %arg0, %c0_i32, %c0_i32_0 : i32, i32, i32
  }
}

module attributes {stable_mosaic.version = 11 : i64} {
  func.func @head_kernel(%arg0: i32, %arg1: i32, %arg2: memref<1x8x32xbf16, #tpu.memory_space<vmem>>, %arg3: memref<32x128xbf16, #tpu.memory_space<vmem>>, %arg4: memref<1x128xf32, #tpu.memory_space<vmem>>, %arg5: memref<1x8x128xf32, #tpu.memory_space<vmem>>) attributes {dimension_semantics = [#tpu.dimension_semantics<parallel>, #tpu.dimension_semantics<arbitrary>], iteration_bounds = array<i64: 1, 2>, scalar_prefetch = 0 : i64, scratch_operands = 0 : i64, tpu.core_type = #tpu.core_type<tc>, window_params = [{transform_indices = @transform_0, window_bounds = array<i64: 1, 8, 32>}, {transform_indices = @transform_1, window_bounds = array<i64: 32, 128>}, {transform_indices = @transform_2, window_bounds = array<i64: 1, 128>}, {transform_indices = @transform_3, window_bounds = array<i64: 1, 8, 128>}]} {
    %c0 = arith.constant 0 : index
    %c0_0 = arith.constant 0 : index
    %c0_1 = arith.constant 0 : index
    %0 = vector.load %arg2[%c0, %c0_0, %c0_1] : memref<1x8x32xbf16, #tpu.memory_space<vmem>>, vector<1x8x32xbf16>
    %1 = vector.shape_cast %0 : vector<1x8x32xbf16> to vector<8x32xbf16>
    %c0_2 = arith.constant 0 : index
    %c0_3 = arith.constant 0 : index
    %2 = vector.load %arg3[%c0_2, %c0_3] : memref<32x128xbf16, #tpu.memory_space<vmem>>, vector<32x128xbf16>
    %cst = arith.constant dense<0.000000e+00> : vector<8x128xf32>
    %3 = tpu.matmul %1, %2, %cst {dimension_numbers = #tpu.dot_dimension_numbers<[1], [0], [0], [1], [0, 0, 1, 1], [], []>} : vector<8x32xbf16>, vector<32x128xbf16>, vector<8x128xf32> -> vector<8x128xf32>
    %c0_4 = arith.constant 0 : index
    %c0_5 = arith.constant 0 : index
    %4 = vector.load %arg4[%c0_4, %c0_5] : memref<1x128xf32, #tpu.memory_space<vmem>>, vector<1x128xf32>
    %5 = vector.broadcast %4 : vector<1x128xf32> to vector<8x128xf32>
    %6 = arith.addf %3, %5 : vector<8x128xf32>
    %c0_6 = arith.constant 0 : index
    %c0_7 = arith.constant 0 : index
    %c0_8 = arith.constant 0 : index
    %7 = vector.load %arg5[%c0_6, %c0_7, %c0_8] : memref<1x8x128xf32, #tpu.memory_space<vmem>>, vector<1x8x128xf32>
    %8 = vector.shape_cast %7 : vector<1x8x128xf32> to vector<8x128xf32>
    %9 = vector.shape_cast %6 : vector<8x128xf32> to vector<1x8x128xf32>
    tpu.vector_store %arg5[%c0_6, %c0_7, %c0_8], %9 {strides = array<i32>} : memref<1x8x128xf32, #tpu.memory_space<vmem>>, vector<1x8x128xf32>,
    return
  }
  func.func @transform_0(%arg0: i32, %arg1: i32) -> (i32, i32, i32) {
    %c0_i32 = arith.constant 0 : i32
    %c0_i32_0 = arith.constant 0 : i32
    %c0_i32_1 = arith.constant 0 : i32
    return %arg1, %c0_i32, %c0_i32_0 : i32, i32, i32
  }
  func.func @transform_1(%arg0: i32, %arg1: i32) -> (i32, i32) {
    %c0_i32 = arith.constant 0 : i32
    %c0_i32_0 = arith.constant 0 : i32
    return %c0_i32, %arg0 : i32, i32
  }
  func.func @transform_2(%arg0: i32, %arg1: i32) -> (i32, i32) {
    %c0_i32 = arith.constant 0 : i32
    %c0_i32_0 = arith.constant 0 : i32
    return %c0_i32, %arg0 : i32, i32
  }
  func.func @transform_3(%arg0: i32, %arg1: i32) -> (i32, i32, i32) {
    %c0_i32 = arith.constant 0 : i32
    %c0_i32_0 = arith.constant 0 : i32
    return %arg1, %c0_i32, %arg0 : i32, i32, i32
  }
}

</mosaic_0001>

<bundles_post_ra>
// kernel: conv1d_gpt_forward.5
= control target key start
LH: loop header
LB: loop body
LE: loop exit
PB: predicated region body
PF: predicated region fallthrough
CT: control target
= control target key end

     0   :  { %8 = vsyncpa [#allocation3], 0  ;;  %s702_s0 = inlined_call_operand.vmem [shape: bf16[2,8,32], index: 0, kind: input, shape index: {}]   ;;  %s703_s1 = inlined_call_operand.vmem [shape: bf16[32,128], index: 1, kind: input, shape index: {}]   ;;  %s704_s2 = inlined_call_operand.vmem [shape: f32[1,128], index: 2, kind: input, shape index: {}]   ;;  %s705_s3 = inlined_call_operand.hbm [shape: f32[2,8,128], index: 3, kind: output, shape index: {}]  }
   0x1   :  { %10 = vsyncpa [#allocation3 + $0x1], 0  ;;  %s581_s12 = smov 0   ;;  %s583_s13 = smov 0  }
   0x2   :  { %s585_s14 = smov 0   ;;  %s587_s15 = smov 0  }
   0x3   :  { %s589_s16 = smov 0   ;;  %s591_s17 = smov 0  }
   0x4 LB: > { %s391_s18 = sadd.s32 4294967295, %s556_s17   ;;  %s392_s19 = sadd.s32 4294967294, %s556_s17   ;;  %s556_s17 = sphi %s591_s17, %s16_s17   ;;  %s552_s16 = sphi %s589_s16, %s712_s16   ;;  %s548_s15 = sphi %s587_s15, %s711_s15   ;;  %s544_s14 = sphi %s585_s14, %s710_s14   ;;  %s540_s13 = sphi %s583_s13, %s709_s13   ;;  %s536_s12 = sphi %s581_s12, %s708_s12  }
   0x5   : > { %s25_s20 = sadd.s32 1, %s552_s16  ;;  %s115_s21 = sadd.s32 1, %s544_s14 }
   0x6   : > { %p26_p0 = scmp.ge.s32.totalorder %s25_s20, 2  ;;  %p125_p1 = scmp.ne.s32.totalorder %s544_s14, %s540_s13 }
   0x7   : > { %p126_p2 = scmp.eq.s32.totalorder %s391_s18, 1  ;;  %p131_p3 = scmp.ne.s32.totalorder %s540_s13, %s536_s12 }
   0x8   : > { %s714_s20 = smov (%p26_p0, %s25_s20), 0  ;;  %p132_p5 = scmp.eq.s32.totalorder %s392_s19, 1 }
   0x9   : > { %p621_p4 = por %p126_p2, %p125_p1  ;;  %s110_s23 = ssub.s32 %s552_s16, %s714_s20 }
   0xa   : > { %p397_p6 = scmp.ge.s32.totalorder %s556_s17, 1  ;;  %p113_p7 = scmp.eq.s32.totalorder %s110_s23, 0 }
   0xb   : > { %p628_p8 = por %p132_p5, %p131_p3  ;;  %p170_p9 = scmp.lt.s32.totalorder %s556_s17, 3 }
   0xc   : > { %s634_s25 = scalar_select %p113_p7, %s544_s14, %s115_s21  }
   0xd   : > { %p171_p10 = pnand %p397_p6, %p170_p9 }
   0xe   : > { %v476_v0 = vld [vmem:[%s703_s1] sm:$0xff] (!%p171_p10)   ;;  %v558_v1 = vmov (!%p171_p10), 0.0   ;;  %v477_v2 = vld [vmem:[%s703_s1 + $0x8] sm:$0xff] (!%p171_p10)   ;;  %vm559_vm0 = vmmov (!%p171_p10), 0   ;;  %p200_p11 = scmp.lt.s32.totalorder (!%p171_p10), %s548_s15, 1  ;;  %vm236_vm1 = vcmask (!%p171_p10), 261120  }
   0xf   : > { %174 = sbr.rel (%p171_p10) target bundleno = 255 (0xff), region = 32  ;;  %411 = vmatprep.subr.bf16.mxu0 (!%p171_p10), %v558_v1  ;;  %415 = vmatprep.mubr.msk.bf16.mxu0 (!%p171_p10), %vm559_vm0, %v558_v1  ;;  %s197_s8 = sand.u32 (!%p171_p10), 1, %s540_s13   ;;  %v400_v4 = vld [vmem:[%s704_s2] ss:$0 sm:$0xff] (!%p171_p10) }
  0x10   : > { %412 = vmatpush3.bf16.msra.mxu0 (!%p171_p10), %v476_v0  ;;  %s398_s9 = sshll.u32 (!%p171_p10), %s197_s8, 3  ;;  %s405_s18 = sshll.u32 (!%p171_p10), %s548_s15, 7 }
  0x11   : > { %413 = vmatprep.subr.bf16.mxu0 (!%p171_p10), %v558_v1  ;;  %s199_s19 = scalar_lea.vmem (!%p171_p10), [#allocation2], %s398_s9  ;;  %s655_s27 = scalar_lea.hbm (!%p171_p10), %s705_s3, %s405_s18 }
  0x12   : > { %s296_s21 = sshll.u32 (!%p171_p10), %s199_s19, 4  ;;  %s282_s28 = scalar_lea.sflag (!%p171_p10), [#allocation3], %s197_s8  ;;  %s657_s21 = int_to_ptr.vmem [resolvable:$true] %s296_s21 }
  0x13   : > { %s560_s29 = smov (!%p171_p10), [#allocation2]  }
  0x14   : > { %414 = vmatpush3.bf16.msra.mxu0 (!%p171_p10), %v477_v2 }
  0x16   : > { %s201_s30 = scalar_select %p200_p11, %s548_s15, 1 }
  0x17   : > { %s478_s15 = scalar_lea.vmem %s657_s21, 128 }
  0x18   : > { %s399_s4 = sshll.u32 %s201_s30, 2  ;;  %p479_p12 = scmp.ne.s32.totalorder %s657_s21, %s478_s15 }
  0x19   : > { %s203_s7 = scalar_lea.vmem %s702_s0, %s399_s4  ;;  %s482_s30 = sshll.u32 %s560_s29, 4  ;;  %s483_s30 = int_to_ptr.vmem [resolvable:$false] %s482_s30 }
  0x1a   : > { %v212_v3 = vld [vmem:[%s203_s7] sm:$0xf]  ;;  %p480_p13 = pnand %p479_p12, %p621_p4  ;;  %s484_s4 = scalar_lea.vmem %s483_s30, 256 }
  0x1b   : > { %416 = vmatmul.mubr.msk.bf16.vlgmr.msra.gmra.mrb[0].mxu0 %vm236_vm1, %v212_v3  ;;  %p485_p1 = scmp.lt.s32.totalorder %s657_s21, %s483_s30  ;;  %p486_p2 = scmp.lt.s32.totalorder %s484_s4, %s478_s15 }
  0x1c   : > { %p481_p0 = pneg %p480_p13 }
  0x1d   : > { %p487_p3 = por %p486_p2, %p485_p1 }
  0x1f   : > { %p488_p5 = pnand %p487_p3, %p481_p0 }
  0xee   : > { %v274_v5 = vpop.f32.mrb[0].mxu0 }
  0xef   : > { %v275_v6 = vadd.f32 %v400_v4, %v274_v5  ;;  %v417_v7 = vpop.f32.mrb[1].mxu0 }
  0xf0   : > { %v277_v8 = vpop.f32.mrb[2].mxu0 }
  0xf1   : > { %280 = vst [vmem:[%s199_s19] sm:$0xff] %v275_v6  ;;  %v418_v9 = vpop.f32.mrb[3].mxu0 }
  0xf2   : > { %491 = shalt.err (!%p488_p5)
}
  0xf3   : > { %s492_s5 = scalar_lea.hbm %s655_s27, 128  ;;  %s496_s8 = scalar_lea.hbm %s705_s3, 256 }
  0xf4   : > { %p493_p6 = scmp.ne.s32.totalorder %s655_s27, %s492_s5  ;;  %p497_p10 = scmp.lt.u32.totalorder %s655_s27, %s705_s3 }
  0xf5   : > { %p498_p11 = scmp.lt.u32.totalorder %s496_s8, %s492_s5  ;;  %p500_p13 = scmp.lt.u32.totalorder %s492_s5, %s655_s27 }
  0xf6   : > { %p494_p7 = pnand %p493_p6, %p621_p4 }
  0xf7   : > { %p499_p12 = por %p498_p11, %p497_p10 }
  0xf8   : > { %p495_p9 = pneg %p494_p7 }
  0xf9   : > { %p501_p0 = por %p500_p13, %p499_p12 }
  0xfb   : > { %p502_p1 = pnand %p501_p0, %p495_p9 }
  0xfd   : > { %505 = shalt.err (!%p502_p1)
}
  0xfe   : > { %419 = dma.vmem_to_hbm [thread:$0]  (%p621_p4), %s657_s21, 128, %s655_s27, %s282_s28  }
  0xff PF: > { %p425_p2 = scmp.ge.s32.totalorder %s556_s17, 2  ;;  %s308_s11 = sand.u32 1, %s536_s12  }
 0x100   : > { %s309_s18 = scalar_lea.sflag [#allocation3], %s308_s11 }
 0x101   : > { %p422_p3 = pnand %p425_p2, %p628_p8 }
 0x103   : > { %531 = dma.done.wait (!%p422_p3), %s309_s18, 128  }
 0x104   : > { %533 = vsyncadd (!%p422_p3), %s309_s18, 4294967168  ;;  %s16_s17 = sadd.s32 1, %s556_s17   ;;  %s708_s12 = smov %s540_s13 }
 0x105   : > { %p13_p5 = scmp.ge.s32.totalorder %s16_s17, 4   ;;  %s709_s13 = smov %s544_s14 }
 0x106   : > { %s710_s14 = smov %s634_s25  ;;  %s711_s15 = smov %s552_s16 }
 0x107   : > { %s712_s16 = smov %s714_s20  ;;  %15 = sbr.rel (!%p13_p5) target bundleno = 4 (0x4), region = 73 }
 0x10e   :  { %314 = vsyncpa [#allocation3], 1 }
 0x10f   :  { %316 = vsyncpa [#allocation3 + $0x1], 1 }

// kernel: conv1d_gpt_forward.4
= control target key start
LH: loop header
LB: loop body
LE: loop exit
PB: predicated region body
PF: predicated region fallthrough
CT: control target
= control target key end

     0   :  { %s2089_s21 = smov 0   ;;  %s2365_s0 = inlined_call_operand.vmem [shape: bf16[2,8,32], index: 0, kind: input, shape index: {}, may-alias: {0,16}]   ;;  %s2366_s1 = inlined_call_operand.vmem [shape: f32[1,32], index: 1, kind: input, shape index: {}]   ;;  %s2367_s2 = inlined_call_operand.vmem [shape: f32[1,32], index: 2, kind: input, shape index: {}]   ;;  %s2368_s3 = inlined_call_operand.vmem [shape: bf16[32,96], index: 3, kind: input, shape index: {}]   ;;  %s2369_s4 = inlined_call_operand.vmem [shape: bf16[32,32], index: 4, kind: input, shape index: {}]   ;;  %s2370_s5 = inlined_call_operand.vmem [shape: f32[1,32], index: 5, kind: input, shape index: {}]   ;;  %s2371_s6 = inlined_call_operand.vmem [shape: bf16[96,32], index: 6, kind: input, shape index: {}]   ;;  %s2372_s7 = inlined_call_operand.vmem [shape: f32[1,32], index: 7, kind: input, shape index: {}]   ;;  %s2373_s8 = inlined_call_operand.vmem [shape: f32[1,32], index: 8, kind: input, shape index: {}]   ;;  %s2374_s9 = inlined_call_operand.vmem [shape: f32[1,32], index: 9, kind: input, shape index: {}]   ;;  %s2375_s10 = inlined_call_operand.vmem [shape: bf16[32,128], index: 10, kind: input, shape index: {}]   ;;  %s2376_s11 = inlined_call_operand.vmem [shape: f32[1,128], index: 11, kind: input, shape index: {}]   ;;  %s2377_s12 = inlined_call_operand.vmem [shape: bf16[128,32], index: 12, kind: input, shape index: {}]   ;;  %s2378_s13 = inlined_call_operand.vmem [shape: f32[1,32], index: 13, kind: input, shape index: {}]   ;;  %s2379_s14 = inlined_call_operand.vmem [shape: f32[1,32], index: 14, kind: input, shape index: {}]   ;;  %s2380_s15 = inlined_call_operand.vmem [shape: f32[1,32], index: 15, kind: input, shape index: {}]   ;;  %s2381_s16 = inlined_call_operand.vmem [shape: bf16[2,8,32], index: 16, kind: output, shape index: {}, may-alias: {0,16}]  }
   0x1   :  { %2382 = sst [smem:[#allocation2_spill]] %s2365_s0 }
   0x2 LB: > { %s1679_s22 = sadd.s32 4294967295, %s1988_s21   ;;  %p1683_p0 = scmp.ge.s32.totalorder %s1988_s21, 1  ;;  %s1988_s21 = sphi %s2089_s21, %s26_s21  }
   0x3   : > { %p461_p1 = scmp.lt.s32.totalorder %s1988_s21, 3 }
   0x5   : > { %p462_p2 = pnand %p1683_p0, %p461_p1 }
   0x6   : > { %p509_p3 = scmp.lt.s32.totalorder (!%p462_p2), %s1679_s22, 1  ;;  %vm522_vm0 = vcmask (!%p462_p2), 261120   ;;  %s2383_s26 = sld [smem:[#allocation2_spill]] (!%p462_p2)  ;;  %v1942_v8 = vld [vmem:[%s2368_s3] sm:$0xff] (!%p462_p2)   ;;  %v1990_v9 = vmov (!%p462_p2), 0.0   ;;  %vm1991_vm1 = vmmov (!%p462_p2), 0   ;;  %v612_v30 = vlaneseq (!%p462_p2) }
   0x7   : > { %465 = sbr.rel (%p462_p2) target bundleno = 3800 (0xed8), region = 84  ;;  %1777 = vmatprep.subr.bf16.mxu0 (!%p462_p2), %v1990_v9  ;;  %1781 = vmatprep.mubr.msk.bf16.mxu0 (!%p462_p2), %vm1991_vm1, %v1990_v9  ;;  %v1943_v10 = vld [vmem:[%s2368_s3 + $0x8] sm:$0xff] (!%p462_p2)   ;;  %v1686_v15 = vld [vmem:[%s2366_s1] ss:$0 sm:$0xff] (!%p462_p2)  ;;  %s1992_s24 = smov (!%p462_p2), 64   ;;  %vm697_vm2 = vcmask (!%p462_p2), 1043456  }
   0x8   : > { %1778 = vmatpush3.bf16.msra.mxu0 (!%p462_p2), %v1942_v8  ;;  %1785 = vmatprep.subr.bf16.mxu1 (!%p462_p2), %v1990_v9  ;;  %v1687_v17 = vld [vmem:[%s2367_s2] ss:$0 sm:$0xff] (!%p462_p2)  ;;  %s1993_s25 = smov (!%p462_p2), 96   ;;  %vm632_vm3 = vcmask (!%p462_p2), 64512   ;;  %v2150_v31 = vshrl.u32 (!%p462_p2), %v612_v30, 7  ;;  %v2152_v32 = vand.u32 (!%p462_p2), 127, %v612_v30 }
   0x9   : > { %1779 = vmatprep.subr.bf16.mxu0 (!%p462_p2), %v1990_v9  ;;  %1787 = vmatprep.mubr.msk.bf16.mxu1 (!%p462_p2), %vm1991_vm1, %v1990_v9  ;;  %s1996_s28 = smov (!%p462_p2), 120   ;;  %s1997_s29 = smov (!%p462_p2), 112   ;;  %v617_v54 = vld [vmem:[%s2369_s4] sm:$0xf] (!%p462_p2)  ;;  %vm1268_vm5 = vcmask (!%p462_p2), 1041408   ;;  %vm1281_vm6 = vcmask (!%p462_p2), 523264  }
   0xa   : > { %vm616_vm4 = vcmp.le.s32.totalorder (!%p462_p2), %v2152_v32, %v2150_v31  ;;  %v746_v55 = vsel (!%p462_p2), %vm697_vm2, %v617_v54, 0  ;;  %s1998_s17 = smov (!%p462_p2), 48   ;;  %s1999_s18 = smov (!%p462_p2), 104   ;;  %vm1339_vm7 = vcmask (!%p462_p2), 785408   ;;  %vm1624_vm8 = vcmask (!%p462_p2), 257024  }
   0xb   : > { %s2000_s19 = smov (!%p462_p2), 56   ;;  %s2001_s20 = smov (!%p462_p2), 32  }
   0xc   : > { %1780 = vmatpush3.bf16.msra.mxu0 (!%p462_p2), %v1943_v10 }
   0xd   : > { %1791 = vmatprep.subr.bf16.mxu0 (!%p462_p2), %v1990_v9 }
   0xe   : > { %s2385_s22 = smov (!%p509_p3, %s1679_s22), 1 }
   0xf   : > { %s1684_s23 = sshll.u32 %s2385_s22, 2 }
  0x10   : > { %s512_s27 = scalar_lea.vmem %s2383_s26, %s1684_s23  ;;  %s1994_s26 = smov 80  }
  0x11   : > { %v518_v0 = vld [vmem:[%s512_s27] sm:$0xf]  ;;  %s1995_s27 = smov 88  }
  0x12   : > { %v2105_v1 = vunpack.c.l.bf16 %v518_v0 }
  0x14   : > { %v523_v2 = vsel %vm522_vm0, %v2105_v1, 0.0 }
  0x15   : > { %524 = vadd.xlane.f32.xlu0 %v523_v2 }
  0xa2   : > { %v525_v3 = vpop.xlane.xlu0 %524 }
  0xa3   : > { %v527_v4 = vmul.f32 0.03125, %v525_v3 }
  0xa5   : > { %v528_v5 = vsub.f32 %v2105_v1, %v527_v4 }
  0xa7   : > { %v529_v6 = vmul.f32 %v528_v5, %v528_v5 }
  0xa9   : > { %v530_v7 = vsel %vm522_vm0, %v529_v6, 0.0 }
  0xaa   : > { %531 = vadd.xlane.f32.xlu0 %v530_v7 }
 0x137   : > { %v532_v11 = vpop.xlane.xlu0 %531 }
 0x138   : > { %v533_v12 = vmul.f32 0.03125, %v532_v11 }
 0x13a   : > { %v534_v13 = vadd.f32 1e-05, %v533_v12 }
 0x13c   : > { %1960 = vrsqrt.f32 %v534_v13 }
 0x146   : > { %v1961_v14 = vpop.eup %1960 }
 0x147   : > { %v536_v16 = vmul.f32 %v1961_v14, %v528_v5 }
 0x149   : > { %v543_v18 = vmul.f32 %v1686_v15, %v536_v16 }
 0x14b   : > { %v550_v19 = vadd.f32 %v1687_v17, %v543_v18 }
 0x14d   : > { %v2131_v20 = vpack.c.bf16 %v550_v19, %v550_v19 }
 0x14f   : > { %1782 = vmatmul.mubr.msk.bf16.vlgmr.msra.gmra.mrb[0].mxu0 %vm522_vm0, %v2131_v20  ;;  %v1267_v11 = vrot.slane %v2131_v20, 6 }
 0x150   : > { %1793 = vmatprep.mubr.msk.bf16.mxu0 %vm1991_vm1, %v1990_v9 }
 0x151   : > { %v2197_v12 = vsel %vm1268_vm5, 0, %v1267_v11 }
 0x152   : > { %v1273_v13 = vrot.slane %v2197_v12, 1  ;;  %v1276_v14 = vrot.slane %v2197_v12, 2 }
 0x222   : > { %v605_v21 = vpop.f32.mrb[0].mxu0 }
 0x223   : > { %v2137_v22 = vpack.c.bf16 %v605_v21, %v605_v21  ;;  %v1783_v23 = vpop.f32.mrb[1].mxu0 }
 0x224   : > { %v608_v24 = vpop.f32.mrb[2].mxu0 }
 0x225   : > { %692 = vrot.lane.b32.xlu0 %v2137_v22, %s1992_s24  ;;  %630 = vrot.lane.b32.xlu1 %v2137_v22, %s1993_s25  ;;  %v1784_v25 = vpop.f32.mrb[3].mxu0  ;;  %s2002_s25 = smov 72  }
 0x297   : > { %v693_v26 = vpop.permute.xlu0 %692  ;;  %v631_v27 = vpop.permute.xlu1 %630 }
 0x298   : > { %v699_v28 = vsel %vm697_vm2, %v693_v26, 0  ;;  %v637_v29 = vsel %vm632_vm3, %v631_v27, 0 }
 0x299   : > { %1786 = vmatpush3.bf16.xpose.msra.mxu1 %v637_v29  ;;  %1792 = vmatpush3.bf16.msra.mxu0 %v699_v28 }
 0x29a   : > { %1803 = vmatprep.subr.bf16.mxu0 %v1990_v9  ;;  %1797 = vmatprep.subr.bf16.mxu1 %v1990_v9 }
 0x2a0   : > { %1788 = vmatmul.mubr.msk.bf16.vlgmr.msra.gmra.mrb[0].mxu1 %vm632_vm3, %v2137_v22 }
 0x2a1   : > { %1799 = vmatprep.mubr.msk.bf16.mxu1 %vm1991_vm1, %v1990_v9  ;;  %1798 = vmatpush3.bf16.msra.mxu1 %v746_v55  ;;  %v619_v55 = vld [vmem:[%s2369_s4 + $0x8] sm:$0xf] }
 0x2a2   : > { %1809 = vmatprep.subr.bf16.mxu1 %v1990_v9 }
 0x373   : > { %v673_v33 = vpop.f32.mrb[0].mxu1 }
 0x374   : > { %v679_v34 = vsel %vm616_vm4, %v673_v33, -inf  ;;  %v1789_v35 = vpop.f32.mrb[1].mxu1 }
 0x375   : > { %v676_v36 = vpop.f32.mrb[2].mxu1  ;;  %v680_v37 = vsel %vm632_vm3, %v679_v34, -inf }
 0x376   : > { %681 = vmax.xlane.f32.xlu1 %v680_v37  ;;  %v1790_v38 = vpop.f32.mrb[3].mxu1 }
 0x387   : > { %950 = vrot.lane.b32.xlu1 %v2137_v22, %s1994_s26 }
 0x403   : > { %v682_v39 = vpop.xlane.xlu1 %681 }
 0x404   : > { %v683_v40 = vsub.f32 %v679_v34, %v682_v39 }
 0x406   : > { %v684_v41 = vmul.f32 1.442695, %v683_v40 }
 0x407   : > { %v951_v50 = vpop.permute.xlu1 %950 }
 0x408   : > { %1962 = vpow2.f32 %v684_v41  ;;  %v956_v52 = vsel %vm632_vm3, %v951_v50, 0 }
 0x412   : > { %v1963_v42 = vpop.eup %1962 }
 0x413   : > { %v686_v43 = vsel %vm632_vm3, %v1963_v42, 0.0 }
 0x414   : > { %687 = vadd.xlane.f32.xlu0 %v686_v43  ;;  %v618_v43 = vld [vmem:[%s2369_s4 + $0x4] sm:$0xf] }
 0x42a   : > { %791 = vrot.lane.b32.xlu0 %v2137_v22, %s1995_s27 }
 0x42e   : > { %789 = vrot.lane.b32.xlu0 %v2137_v22, %s1996_s28 }
 0x432   : > { %948 = vrot.lane.b32.xlu0 %v2137_v22, %s1997_s29  ;;  %s2003_s29 = smov 40  }
 0x4a1   : > { %v688_v44 = vpop.xlane.xlu0 %687 }
 0x4a2   : > { %1964 = vrcp.f32 %v688_v44  ;;  %v905_v44 = vsel %vm697_vm2, %v618_v43, 0  ;;  %v1950_v43 = vld [vmem:[%s2375_s10] sm:$0xff]  }
 0x4a5   : > { %v792_v47 = vpop.permute.xlu0 %791 }
 0x4a6   : > { %v797_v49 = vsel %vm632_vm3, %v792_v47, 0 }
 0x4a9   : > { %v790_v51 = vpop.permute.xlu0 %789 }
 0x4ac   : > { %v1965_v45 = vpop.eup %1964 }
 0x4ad   : > { %v690_v46 = vmul.f32 %v1965_v45, %v1963_v42  ;;  %v949_v53 = vpop.permute.xlu0 %948 }
 0x4af   : > { %v691_v48 = vpack.c.bf16 %v690_v46, %v690_v46 }
 0x4b1   : > { %1794 = vmatmul.mubr.msk.bf16.vlgmr.msra.gmra.mrb[4].mxu0 %vm632_vm3, %v691_v48 }
 0x4b2   : > { %1804 = vmatpush3.bf16.xpose.msra.mxu0 %v797_v49  ;;  %1805 = vmatprep.mubr.msk.bf16.mxu0 %vm1991_vm1, %v1990_v9 }
 0x4b3   : > { %1821 = vmatprep.subr.bf16.mxu0 %v1990_v9 }
 0x4b9   : > { %1806 = vmatmul.mubr.msk.bf16.vlgmr.msra.gmra.mrb[8].mxu0 %vm632_vm3, %v790_v51 }
 0x4ba   : > { %1822 = vmatpush3.bf16.xpose.msra.mxu0 %v956_v52  ;;  %1823 = vmatprep.mubr.msk.bf16.mxu0 %vm1991_vm1, %v1990_v9 }
 0x4bb   : > { %1827 = vmatprep.subr.bf16.mxu0 %v1990_v9 }
 0x4c1   : > { %1824 = vmatmul.mubr.msk.bf16.vlgmr.msra.gmra.mrb[12].mxu0 %vm632_vm3, %v949_v53 }
 0x4c2   : > { %1829 = vmatprep.mubr.msk.bf16.mxu0 %vm1991_vm1, %v1990_v9 }
 0x584   : > { %v735_v56 = vpop.f32.mrb[4].mxu0 }
 0x585   : > { %v741_v57 = vpack.c.bf16 %v735_v56, %v735_v56  ;;  %v1795_v58 = vpop.f32.mrb[5].mxu0 }
 0x586   : > { %v738_v59 = vpop.f32.mrb[6].mxu0 }
 0x587   : > { %v1796_v60 = vpop.f32.mrb[7].mxu0  ;;  %1800 = vmatmul.mubr.msk.bf16.vlgmr.msra.gmra.mrb[4].mxu1 %vm632_vm3, %v741_v57  ;;  %v1064_v59 = vsel %vm697_vm2, %v619_v55, 0 }
 0x588   : > { %1811 = vmatprep.mubr.msk.bf16.mxu1 %vm1991_vm1, %v1990_v9 }
 0x58c   : > { %v833_v61 = vpop.f32.mrb[8].mxu0 }
 0x58d   : > { %v1807_v62 = vpop.f32.mrb[9].mxu0  ;;  %v839_v8 = vsel %vm616_vm4, %v833_v61, -inf }
 0x58e   : > { %v836_v63 = vpop.f32.mrb[10].mxu0  ;;  %v840_v10 = vsel %vm632_vm3, %v839_v8, -inf }
 0x58f   : > { %v1808_v0 = vpop.f32.mrb[11].mxu0 }
 0x594   : > { %v992_v2 = vpop.f32.mrb[12].mxu0 }
 0x595   : > { %v998_v3 = vsel %vm616_vm4, %v992_v2, -inf  ;;  %v1825_v4 = vpop.f32.mrb[13].mxu0 }
 0x596   : > { %v995_v5 = vpop.f32.mrb[14].mxu0  ;;  %v999_v6 = vsel %vm632_vm3, %v998_v3, -inf }
 0x597   : > { %1000 = vmax.xlane.f32.xlu0 %v999_v6  ;;  %v1826_v7 = vpop.f32.mrb[15].mxu0 }
 0x598   : > { %v620_v7 = vld [vmem:[%s2369_s4 + $0xc] sm:$0xf] }
 0x599   : > { %v1223_v11 = vsel %vm697_vm2, %v620_v7, 0 }
 0x5ad   : > { %1011 = vrot.lane.b32.xlu0 %v2137_v22, %s1998_s17 }
 0x5b1   : > { %1107 = vrot.lane.b32.xlu0 %v2137_v22, %s1999_s18 }
 0x5d0   : > { %841 = vmax.xlane.f32.xlu0 %v840_v10 }
 0x5e6   : > { %852 = vrot.lane.b32.xlu0 %v2137_v22, %s2000_s19  ;;  %s516_s19 = scalar_lea.vmem %s2381_s16, %s1684_s23 }
 0x5ea   : > { %1274 = vrot.lane.b32.xlu0 %v1273_v13, %s2001_s20  ;;  %v1944_v13 = vld [vmem:[%s2371_s6] sm:$0xff]  }
 0x5ee   : > { %1277 = vrot.lane.b32.xlu0 %v1276_v14, %s1992_s24 }
 0x624   : > { %v1001_v15 = vpop.xlane.xlu0 %1000 }
 0x625   : > { %v1002_v16 = vsub.f32 %v998_v3, %v1001_v15 }
 0x627   : > { %v1003_v17 = vmul.f32 1.442695, %v1002_v16 }
 0x628   : > { %v1012_v18 = vpop.permute.xlu0 %1011 }
 0x629   : > { %1966 = vpow2.f32 %v1003_v17  ;;  %v1017_v19 = vsel %vm697_vm2, %v1012_v18, 0  ;;  %v1945_v18 = vld [vmem:[%s2371_s6 + $0x8] sm:$0xff]  }
 0x62a   : > { %1828 = vmatpush3.bf16.msra.mxu0 %v1017_v19  ;;  %v1946_v19 = vld [vmem:[%s2371_s6 + $0x10] sm:$0xff]  }
 0x62b   : > { %1839 = vmatprep.subr.bf16.mxu0 %v1990_v9 }
 0x62c   : > { %v1108_v23 = vpop.permute.xlu0 %1107 }
 0x633   : > { %v1967_v20 = vpop.eup %1966 }
 0x634   : > { %v1005_v21 = vsel %vm632_vm3, %v1967_v20, 0.0 }
 0x635   : > { %1006 = vadd.xlane.f32.xlu1 %v1005_v21  ;;  %v1948_v21 = vld [vmem:[%s2371_s6 + $0x20] sm:$0xff]  }
 0x646   : > { %1109 = vrot.lane.b32.xlu1 %v2137_v22, %s2002_s25 }
 0x65d   : > { %v842_v24 = vpop.xlane.xlu0 %841 }
 0x65e   : > { %v843_v25 = vsub.f32 %v839_v8, %v842_v24  ;;  %v1949_v24 = vld [vmem:[%s2371_s6 + $0x28] sm:$0xff]  }
 0x660   : > { %v844_v26 = vmul.f32 1.442695, %v843_v25 }
 0x661   : > { %v853_v27 = vpop.permute.xlu0 %852 }
 0x662   : > { %1968 = vpow2.f32 %v844_v26  ;;  %v858_v28 = vsel %vm697_vm2, %v853_v27, 0 }
 0x663   : > { %1810 = vmatpush3.bf16.msra.mxu1 %v858_v28  ;;  %v1691_v28 = vld [vmem:[%s2370_s5] ss:$0 sm:$0xff] }
 0x664   : > { %1815 = vmatprep.subr.bf16.mxu1 %v1990_v9 }
 0x66c   : > { %v1969_v29 = vpop.eup %1968 }
 0x66d   : > { %v846_v30 = vsel %vm632_vm3, %v1969_v29, 0.0 }
 0x66e   : > { %847 = vadd.xlane.f32.xlu1 %v846_v30  ;;  %v1704_v30 = vld [vmem:[%s2372_s7] ss:$0 sm:$0xff] }
 0x6c2   : > { %v1007_v33 = vpop.xlane.xlu1 %1006 }
 0x6c3   : > { %1970 = vrcp.f32 %v1007_v33 }
 0x6c6   : > { %v1110_v36 = vpop.permute.xlu1 %1109 }
 0x6c7   : > { %v1115_v38 = vsel %vm632_vm3, %v1110_v36, 0 }
 0x6cd   : > { %v1971_v34 = vpop.eup %1970 }
 0x6ce   : > { %v1009_v35 = vmul.f32 %v1971_v34, %v1967_v20  ;;  %v1947_v20 = vld [vmem:[%s2371_s6 + $0x18] sm:$0xff]  }
 0x6d0   : > { %v1010_v37 = vpack.c.bf16 %v1009_v35, %v1009_v35 }
 0x6d2   : > { %1830 = vmatmul.mubr.msk.bf16.vlgmr.msra.gmra.mrb[16].mxu0 %vm632_vm3, %v1010_v37 }
 0x6d3   : > { %1840 = vmatpush3.bf16.xpose.msra.mxu0 %v1115_v38  ;;  %1841 = vmatprep.mubr.msk.bf16.mxu0 %vm1991_vm1, %v1990_v9 }
 0x6d4   : > { %1873 = vmatprep.subr.bf16.mxu0 %v1990_v9 }
 0x6da   : > { %1842 = vmatmul.mubr.msk.bf16.vlgmr.msra.gmra.mrb[20].mxu0 %vm632_vm3, %v1108_v23  ;;  %v1275_v23 = vpop.permute.xlu0 %1274 }
 0x6db   : > { %1877 = vmatprep.mubr.msk.bf16.mxu0 %vm1991_vm1, %v1990_v9  ;;  %v1280_v26 = vsel %vm522_vm0, %v2197_v12, %v1275_v23  ;;  %1874 = vmatpush3.bf16.msra.mxu0 %v1950_v43 }
 0x6dc   : > { %1875 = vmatprep.subr.bf16.mxu0 %v1990_v9 }
 0x6de   : > { %v1278_v25 = vpop.permute.xlu0 %1277 }
 0x6df   : > { %v1283_v27 = vsel %vm1281_vm6, %v1280_v26, %v1278_v25  ;;  %v1728_v26 = vld [vmem:[%s2380_s15] ss:$0 sm:$0xff] }
 0x6fb   : > { %v848_v39 = vpop.xlane.xlu1 %847 }
 0x6fc   : > { %1972 = vrcp.f32 %v848_v39 }
 0x706   : > { %v1973_v40 = vpop.eup %1972 }
 0x707   : > { %v850_v41 = vmul.f32 %v1973_v40, %v1969_v29  ;;  %v1901_v29 = vadd.f32 %v1691_v28, %v2105_v1 }
 0x709   : > { %v851_v42 = vpack.c.bf16 %v850_v41, %v850_v41  ;;  %v1902_v33 = vadd.f32 %v1901_v29, %v1704_v30 }
 0x70b   : > { %1812 = vmatmul.mubr.msk.bf16.vlgmr.msra.gmra.mrb[8].mxu1 %vm632_vm3, %v851_v42 }
 0x70c   : > { %1817 = vmatprep.mubr.msk.bf16.mxu1 %vm1991_vm1, %v1990_v9  ;;  %1816 = vmatpush3.bf16.msra.mxu1 %v905_v44  ;;  %v1951_v44 = vld [vmem:[%s2375_s10 + $0x8] sm:$0xff]  }
 0x70d   : > { %1833 = vmatprep.subr.bf16.mxu1 %v1990_v9  ;;  %1876 = vmatpush3.bf16.msra.mxu0 %v1951_v44 }
 0x70e   : > { %1881 = vmatprep.subr.bf16.mxu0 %v1990_v9 }
 0x7a5   : > { %v1053_v45 = vpop.f32.mrb[16].mxu0 }
 0x7a6   : > { %v1831_v46 = vpop.f32.mrb[17].mxu0  ;;  %v1059_v31 = vpack.c.bf16 %v1053_v45, %v1053_v45 }
 0x7a7   : > { %v1056_v47 = vpop.f32.mrb[18].mxu0 }
 0x7a8   : > { %v1832_v48 = vpop.f32.mrb[19].mxu0 }
 0x7ad   : > { %v1151_v49 = vpop.f32.mrb[20].mxu0 }
 0x7ae   : > { %v1157_v50 = vsel %vm616_vm4, %v1151_v49, -inf  ;;  %v1843_v51 = vpop.f32.mrb[21].mxu0  ;;  %v1712_v49 = vld [vmem:[%s2373_s8] ss:$0 sm:$0xff] }
 0x7af   : > { %v1154_v52 = vpop.f32.mrb[22].mxu0  ;;  %v1158_v53 = vsel %vm632_vm3, %v1157_v50, -inf  ;;  %v1713_v51 = vld [vmem:[%s2374_s9] ss:$0 sm:$0xff] }
 0x7b0   : > { %1159 = vmax.xlane.f32.xlu1 %v1158_v53  ;;  %v1844_v54 = vpop.f32.mrb[23].mxu0 }
 0x7b1   : > { %v1952_v54 = vld [vmem:[%s2377_s12] sm:$0xff]  }
 0x7de   : > { %v894_v56 = vpop.f32.mrb[8].mxu1 }
 0x7df   : > { %v900_v57 = vpack.c.bf16 %v894_v56, %v894_v56  ;;  %v1813_v58 = vpop.f32.mrb[9].mxu1  ;;  %v1953_v56 = vld [vmem:[%s2377_s12 + $0x8] sm:$0xff]  }
 0x7e0   : > { %v897_v60 = vpop.f32.mrb[10].mxu1  ;;  %v1955_v58 = vld [vmem:[%s2377_s12 + $0x18] sm:$0xff]  }
 0x7e1   : > { %v1814_v61 = vpop.f32.mrb[11].mxu1  ;;  %1818 = vmatmul.mubr.msk.bf16.vlgmr.msra.gmra.mrb[4].mxu1 %vm632_vm3, %v900_v57  ;;  %v1954_v57 = vld [vmem:[%s2377_s12 + $0x10] sm:$0xff]   ;;  %v1957_v60 = vld [vmem:[%s2377_s12 + $0x28] sm:$0xff]  }
 0x7e2   : > { %1834 = vmatpush3.bf16.msra.mxu1 %v1064_v59  ;;  %1835 = vmatprep.mubr.msk.bf16.mxu1 %vm1991_vm1, %v1990_v9  ;;  %v1956_v59 = vld [vmem:[%s2377_s12 + $0x20] sm:$0xff]   ;;  %v1958_v61 = vld [vmem:[%s2377_s12 + $0x30] sm:$0xff]  }
 0x7e3   : > { %1845 = vmatprep.subr.bf16.mxu1 %v1990_v9 }
 0x7ed   : > { %1836 = vmatmul.mubr.msk.bf16.vlgmr.msra.gmra.mrb[4].mxu1 %vm632_vm3, %v1059_v31  ;;  %v1959_v31 = vld [vmem:[%s2377_s12 + $0x38] sm:$0xff]  }
 0x7ee   : > { %1847 = vmatprep.mubr.msk.bf16.mxu1 %vm1991_vm1, %v1990_v9 }
 0x83d   : > { %v1160_v32 = vpop.xlane.xlu1 %1159 }
 0x83e   : > { %v1161_v62 = vsub.f32 %v1157_v50, %v1160_v32  ;;  %v1714_v32 = vld [vmem:[%s2376_s11] ss:$0 sm:$0xff] }
 0x840   : > { %v1162_v63 = vmul.f32 1.442695, %v1161_v62 }
 0x842   : > { %1974 = vpow2.f32 %v1162_v63 }
 0x84c   : > { %v1975_v0 = vpop.eup %1974 }
 0x84d   : > { %v1164_v2 = vsel %vm632_vm3, %v1975_v0, 0.0 }
 0x84e   : > { %1165 = vadd.xlane.f32.xlu1 %v1164_v2 }
 0x85f   : > { %1170 = vrot.lane.b32.xlu1 %v2137_v22, %s2003_s29 }
 0x8db   : > { %v1166_v3 = vpop.xlane.xlu1 %1165 }
 0x8dc   : > { %1976 = vrcp.f32 %v1166_v3 }
 0x8df   : > { %v1171_v4 = vpop.permute.xlu1 %1170 }
 0x8e0   : > { %v1176_v5 = vsel %vm697_vm2, %v1171_v4, 0 }
 0x8e1   : > { %1846 = vmatpush3.bf16.msra.mxu1 %v1176_v5 }
 0x8e2   : > { %1851 = vmatprep.subr.bf16.mxu1 %v1990_v9 }
 0x8e6   : > { %v1977_v6 = vpop.eup %1976 }
 0x8e7   : > { %v1168_v8 = vmul.f32 %v1977_v6, %v1975_v0 }
 0x8e9   : > { %v1169_v10 = vpack.c.bf16 %v1168_v8, %v1168_v8 }
 0x8eb   : > { %1848 = vmatmul.mubr.msk.bf16.vlgmr.msra.gmra.mrb[12].mxu1 %vm632_vm3, %v1169_v10 }
 0x8ec   : > { %1852 = vmatpush3.bf16.msra.mxu1 %v1223_v11  ;;  %1853 = vmatprep.mubr.msk.bf16.mxu1 %vm1991_vm1, %v1990_v9 }
 0x8ed   : > { %1857 = vmatprep.subr.bf16.mxu1 %v1990_v9 }
 0x9be   : > { %v1212_v22 = vpop.f32.mrb[12].mxu1 }
 0x9bf   : > { %v1218_v14 = vpack.c.bf16 %v1212_v22, %v1212_v22  ;;  %v1849_v15 = vpop.f32.mrb[13].mxu1 }
 0x9c0   : > { %v1215_v16 = vpop.f32.mrb[14].mxu1 }
 0x9c1   : > { %v1850_v17 = vpop.f32.mrb[15].mxu1  ;;  %1854 = vmatmul.mubr.msk.bf16.vlgmr.msra.gmra.mrb[4].mxu1 %vm632_vm3, %v1218_v14 }
 0x9c2   : > { %1858 = vmatpush3.bf16.msra.mxu1 %v1944_v13  ;;  %1869 = vmatprep.mubr.msk.bf16.mxu1 %vm1991_vm1, %v1990_v9 }
 0x9c3   : > { %1859 = vmatprep.subr.bf16.mxu1 %v1990_v9 }
 0x9c6   : > { %1860 = vmatpush3.bf16.msra.mxu1 %v1945_v18 }
 0x9c7   : > { %1861 = vmatprep.subr.bf16.mxu1 %v1990_v9 }
 0x9ca   : > { %1862 = vmatpush3.bf16.msra.mxu1 %v1946_v19 }
 0x9cb   : > { %1863 = vmatprep.subr.bf16.mxu1 %v1990_v9 }
 0x9ce   : > { %1864 = vmatpush3.bf16.msra.mxu1 %v1947_v20 }
 0x9cf   : > { %1865 = vmatprep.subr.bf16.mxu1 %v1990_v9 }
 0x9d2   : > { %1866 = vmatpush3.bf16.msra.mxu1 %v1948_v21 }
 0x9d3   : > { %1867 = vmatprep.subr.bf16.mxu1 %v1990_v9 }
 0x9d6   : > { %1868 = vmatpush3.bf16.msra.mxu1 %v1949_v24  ;;  %v1727_v24 = vld [vmem:[%s2379_s14] ss:$0 sm:$0xff] }
 0x9d9   : > { %1870 = vmatmul.mubr.msk.bf16.vlgmr.msra.gmra.mrb[4].mxu1 %vm1339_vm7, %v1283_v27 }
 0xaac   : > { %v1376_v34 = vpop.f32.mrb[4].mxu1 }
 0xaad   : > { %v2288_v35 = vadd.f32 %v1902_v33, %v1376_v34  ;;  %v1871_v36 = vpop.f32.mrb[5].mxu1 }
 0xaae   : > { %v1379_v37 = vpop.f32.mrb[6].mxu1 }
 0xaaf   : > { %v1872_v38 = vpop.f32.mrb[7].mxu1  ;;  %v1386_v12 = vsel %vm522_vm0, %v2288_v35, 0.0 }
 0xab0   : > { %1387 = vadd.xlane.f32.xlu0 %v1386_v12 }
 0xb3d   : > { %v1388_v39 = vpop.xlane.xlu0 %1387 }
 0xb3e   : > { %v1389_v40 = vmul.f32 0.03125, %v1388_v39 }
 0xb40   : > { %v1390_v41 = vsub.f32 %v2288_v35, %v1389_v40 }
 0xb42   : > { %v1391_v1 = vmul.f32 %v1390_v41, %v1390_v41 }
 0xb44   : > { %v1392_v42 = vsel %vm522_vm0, %v1391_v1, 0.0 }
 0xb45   : > { %1393 = vadd.xlane.f32.xlu1 %v1392_v42 }
 0xbd2   : > { %v1394_v45 = vpop.xlane.xlu1 %1393 }
 0xbd3   : > { %v1395_v46 = vmul.f32 0.03125, %v1394_v45 }
 0xbd5   : > { %v1396_v47 = vadd.f32 1e-05, %v1395_v46 }
 0xbd7   : > { %1978 = vrsqrt.f32 %v1396_v47 }
 0xbe1   : > { %v1979_v48 = vpop.eup %1978 }
 0xbe2   : > { %v1398_v50 = vmul.f32 %v1979_v48, %v1390_v41 }
 0xbe4   : > { %v1405_v52 = vmul.f32 %v1712_v49, %v1398_v50 }
 0xbe6   : > { %v1412_v53 = vadd.f32 %v1713_v51, %v1405_v52 }
 0xbe8   : > { %v1413_v55 = vpack.c.bf16 %v1412_v53, %v1412_v53 }
 0xbea   : > { %1878 = vmatmul.mubr.msk.bf16.vlgmr.msra.gmra.mrb[24].mxu0 %vm522_vm0, %v1413_v55 }
 0xbeb   : > { %1882 = vmatpush3.bf16.msra.mxu0 %v1952_v54  ;;  %1897 = vmatprep.mubr.msk.bf16.mxu0 %vm1991_vm1, %v1990_v9 }
 0xbec   : > { %1883 = vmatprep.subr.bf16.mxu0 %v1990_v9 }
 0xbef   : > { %1884 = vmatpush3.bf16.msra.mxu0 %v1953_v56 }
 0xbf0   : > { %1885 = vmatprep.subr.bf16.mxu0 %v1990_v9 }
 0xbf3   : > { %1886 = vmatpush3.bf16.msra.mxu0 %v1954_v57 }
 0xbf4   : > { %1887 = vmatprep.subr.bf16.mxu0 %v1990_v9 }
 0xbf7   : > { %1888 = vmatpush3.bf16.msra.mxu0 %v1955_v58 }
 0xbf8   : > { %1889 = vmatprep.subr.bf16.mxu0 %v1990_v9 }
 0xbfb   : > { %1890 = vmatpush3.bf16.msra.mxu0 %v1956_v59 }
 0xbfc   : > { %1891 = vmatprep.subr.bf16.mxu0 %v1990_v9 }
 0xbff   : > { %1892 = vmatpush3.bf16.msra.mxu0 %v1957_v60 }
 0xc00   : > { %1893 = vmatprep.subr.bf16.mxu0 %v1990_v9 }
 0xc03   : > { %1894 = vmatpush3.bf16.msra.mxu0 %v1958_v61 }
 0xc04   : > { %1895 = vmatprep.subr.bf16.mxu0 %v1990_v9  ;;  %v1718_v9 = vld [vmem:[%s2378_s13] ss:$0 sm:$0xff] }
 0xc07   : > { %1896 = vmatpush3.bf16.msra.mxu0 %v1959_v31 }
 0xcbd   : > { %v1474_v62 = vpop.f32.mrb[24].mxu0 }
 0xcbe   : > { %v1475_v63 = vadd.f32 %v1714_v32, %v1474_v62  ;;  %v1879_v0 = vpop.f32.mrb[25].mxu0 }
 0xcbf   : > { %v1477_v2 = vpop.f32.mrb[26].mxu0 }
 0xcc0   : > { %v1480_v3 = vmax.f32 %v1475_v63, 0.0  ;;  %v1880_v4 = vpop.f32.mrb[27].mxu0 }
 0xcc2   : > { %v1481_v5 = vpack.c.bf16 %v1480_v3, %v1480_v3 }
 0xcc4   : > { %1898 = vmatmul.mubr.bf16.vlgmr.msra.gmra.mrb[28].mxu0 %v1481_v5 }
 0xd97   : > { %v1587_v6 = vpop.f32.mrb[28].mxu0 }
 0xd98   : > { %v1588_v7 = vadd.f32 %v1718_v9, %v1587_v6  ;;  %v1899_v8 = vpop.f32.mrb[29].mxu0 }
 0xd99   : > { %v1590_v10 = vpop.f32.mrb[30].mxu0 }
 0xd9a   : > { %v1900_v11 = vpop.f32.mrb[31].mxu0  ;;  %v1593_v22 = vadd.f32 %v2288_v35, %v1588_v7 }
 0xd9c   : > { %v1596_v13 = vsel %vm522_vm0, %v1593_v22, 0.0 }
 0xd9d   : > { %1597 = vadd.xlane.f32.xlu0 %v1596_v13 }
 0xe2a   : > { %v1598_v14 = vpop.xlane.xlu0 %1597 }
 0xe2b   : > { %v1599_v15 = vmul.f32 0.03125, %v1598_v14 }
 0xe2d   : > { %v1600_v16 = vsub.f32 %v1593_v22, %v1599_v15 }
 0xe2f   : > { %v1601_v17 = vmul.f32 %v1600_v16, %v1600_v16 }
 0xe31   : > { %v1602_v18 = vsel %vm522_vm0, %v1601_v17, 0.0 }
 0xe32   : > { %1603 = vadd.xlane.f32.xlu0 %v1602_v18 }
 0xebf   : > { %v1604_v19 = vpop.xlane.xlu0 %1603 }
 0xec0   : > { %v1605_v20 = vmul.f32 0.03125, %v1604_v19 }
 0xec2   : > { %v1606_v21 = vadd.f32 1e-05, %v1605_v20 }
 0xec4   : > { %1980 = vrsqrt.f32 %v1606_v21 }
 0xece   : > { %v1981_v23 = vpop.eup %1980 }
 0xecf   : > { %v1608_v25 = vmul.f32 %v1981_v23, %v1600_v16 }
 0xed1   : > { %v1615_v27 = vmul.f32 %v1727_v24, %v1608_v25 }
 0xed3   : > { %v1622_v28 = vadd.f32 %v1728_v26, %v1615_v27 }
 0xed5   : > { %v1623_v29 = vpack.c.bf16 %v1622_v28, %v1622_v28 }
 0xed7   : > { %1625 = vst.msk [vmem:[%s516_s19] sm:$0xf] %vm1624_vm8, %v1623_v29 }
 0xed8 PF: > { %s26_s21 = sadd.s32 1, %s1988_s21  }
 0xed9   : > { %p23_p4 = scmp.ge.s32.totalorder %s26_s21, 4  }
 0xedb   :  { %25 = sbr.rel (!%p23_p4) target bundleno = 2 (0x2), region = 114 }

// kernel: conv1d_gpt_forward.3
= control target key start
LH: loop header
LB: loop body
LE: loop exit
PB: predicated region body
PF: predicated region fallthrough
CT: control target
= control target key end

     0   :  { %s2061_s21 = smov 0   ;;  %s2330_s0 = inlined_call_operand.vmem [shape: bf16[2,8,32], index: 0, kind: input, shape index: {}, may-alias: {0,16}]   ;;  %s2331_s1 = inlined_call_operand.vmem [shape: f32[1,32], index: 1, kind: input, shape index: {}]   ;;  %s2332_s2 = inlined_call_operand.vmem [shape: f32[1,32], index: 2, kind: input, shape index: {}]   ;;  %s2333_s3 = inlined_call_operand.vmem [shape: bf16[32,96], index: 3, kind: input, shape index: {}]   ;;  %s2334_s4 = inlined_call_operand.vmem [shape: bf16[32,32], index: 4, kind: input, shape index: {}]   ;;  %s2335_s5 = inlined_call_operand.vmem [shape: f32[1,32], index: 5, kind: input, shape index: {}]   ;;  %s2336_s6 = inlined_call_operand.vmem [shape: bf16[96,32], index: 6, kind: input, shape index: {}]   ;;  %s2337_s7 = inlined_call_operand.vmem [shape: f32[1,32], index: 7, kind: input, shape index: {}]   ;;  %s2338_s8 = inlined_call_operand.vmem [shape: f32[1,32], index: 8, kind: input, shape index: {}]   ;;  %s2339_s9 = inlined_call_operand.vmem [shape: f32[1,32], index: 9, kind: input, shape index: {}]   ;;  %s2340_s10 = inlined_call_operand.vmem [shape: bf16[32,128], index: 10, kind: input, shape index: {}]   ;;  %s2341_s11 = inlined_call_operand.vmem [shape: f32[1,128], index: 11, kind: input, shape index: {}]   ;;  %s2342_s12 = inlined_call_operand.vmem [shape: bf16[128,32], index: 12, kind: input, shape index: {}]   ;;  %s2343_s13 = inlined_call_operand.vmem [shape: f32[1,32], index: 13, kind: input, shape index: {}]   ;;  %s2344_s14 = inlined_call_operand.vmem [shape: f32[1,32], index: 14, kind: input, shape index: {}]   ;;  %s2345_s15 = inlined_call_operand.vmem [shape: f32[1,32], index: 15, kind: input, shape index: {}]   ;;  %s2346_s16 = inlined_call_operand.vmem [shape: bf16[2,8,32], index: 16, kind: output, shape index: {}, may-alias: {0,16}]  }
   0x1   :  { %2347 = sst [smem:[#allocation2_spill]] %s2330_s0 }
   0x2 LB: > { %s1655_s22 = sadd.s32 4294967295, %s1960_s21   ;;  %p1659_p0 = scmp.ge.s32.totalorder %s1960_s21, 1  ;;  %s1960_s21 = sphi %s2061_s21, %s26_s21  }
   0x3   : > { %p461_p1 = scmp.lt.s32.totalorder %s1960_s21, 3 }
   0x5   : > { %p462_p2 = pnand %p1659_p0, %p461_p1 }
   0x6   : > { %p509_p3 = scmp.lt.s32.totalorder (!%p462_p2), %s1655_s22, 1  ;;  %vm522_vm0 = vcmask (!%p462_p2), 261120   ;;  %s2348_s24 = sld [smem:[#allocation2_spill]] (!%p462_p2)  ;;  %v1916_v8 = vld [vmem:[%s2333_s3] sm:$0xff] (!%p462_p2)   ;;  %v1962_v9 = vmov (!%p462_p2), 0.0   ;;  %vm1963_vm1 = vmmov (!%p462_p2), 0   ;;  %v612_v30 = vlaneseq (!%p462_p2) }
   0x7   : > { %465 = sbr.rel (%p462_p2) target bundleno = 3487 (0xd9f), region = 84  ;;  %1751 = vmatprep.subr.bf16.mxu0 (!%p462_p2), %v1962_v9  ;;  %1755 = vmatprep.mubr.msk.bf16.mxu0 (!%p462_p2), %vm1963_vm1, %v1962_v9  ;;  %v1917_v10 = vld [vmem:[%s2333_s3 + $0x8] sm:$0xff] (!%p462_p2)   ;;  %v1662_v15 = vld [vmem:[%s2331_s1] ss:$0 sm:$0xff] (!%p462_p2)  ;;  %s1964_s19 = smov (!%p462_p2), 64   ;;  %vm697_vm2 = vcmask (!%p462_p2), 1043456  }
   0x8   : > { %1752 = vmatpush3.bf16.msra.mxu0 (!%p462_p2), %v1916_v8  ;;  %1759 = vmatprep.subr.bf16.mxu1 (!%p462_p2), %v1962_v9  ;;  %v1663_v17 = vld [vmem:[%s2332_s2] ss:$0 sm:$0xff] (!%p462_p2)  ;;  %s1965_s20 = smov (!%p462_p2), 96   ;;  %vm632_vm3 = vcmask (!%p462_p2), 64512   ;;  %v2122_v31 = vshrl.u32 (!%p462_p2), %v612_v30, 7  ;;  %v2124_v32 = vand.u32 (!%p462_p2), 127, %v612_v30 }
   0x9   : > { %1753 = vmatprep.subr.bf16.mxu0 (!%p462_p2), %v1962_v9  ;;  %1761 = vmatprep.mubr.msk.bf16.mxu1 (!%p462_p2), %vm1963_vm1, %v1962_v9  ;;  %s1966_s15 = smov (!%p462_p2), 80   ;;  %s1967_s23 = smov (!%p462_p2), 88   ;;  %v617_v54 = vld [vmem:[%s2334_s4] sm:$0xf] (!%p462_p2)  ;;  %vm1268_vm5 = vcmask (!%p462_p2), 1040384   ;;  %vm1286_vm6 = vcmask (!%p462_p2), 523264  }
   0xa   : > { %vm616_vm4 = vcmp.le.s32.totalorder (!%p462_p2), %v2124_v32, %v2122_v31  ;;  %v746_v55 = vsel (!%p462_p2), %vm697_vm2, %v617_v54, 0  ;;  %s1970_s28 = smov (!%p462_p2), 48   ;;  %s1971_s29 = smov (!%p462_p2), 104   ;;  %vm1344_vm7 = vcmask (!%p462_p2), 785408   ;;  %vm1600_vm8 = vcmask (!%p462_p2), 257024  }
   0xb   : > { %s1972_s30 = smov (!%p462_p2), 56   ;;  %s1973_s0 = smov (!%p462_p2), 32  }
   0xc   : > { %1754 = vmatpush3.bf16.msra.mxu0 (!%p462_p2), %v1917_v10  ;;  %s1974_s17 = smov (!%p462_p2), 72  }
   0xd   : > { %1765 = vmatprep.subr.bf16.mxu0 (!%p462_p2), %v1962_v9 }
   0xe   : > { %s2350_s22 = smov (!%p509_p3, %s1655_s22), 1 }
   0xf   : > { %s1660_s14 = sshll.u32 %s2350_s22, 2 }
  0x10   : > { %s512_s25 = scalar_lea.vmem %s2348_s24, %s1660_s14  ;;  %s1968_s24 = smov 120  }
  0x11   : > { %v518_v0 = vld [vmem:[%s512_s25] sm:$0xf]  ;;  %s1969_s25 = smov 112  }
  0x12   : > { %v2077_v1 = vunpack.c.l.bf16 %v518_v0 }
  0x14   : > { %v523_v2 = vsel %vm522_vm0, %v2077_v1, 0.0 }
  0x15   : > { %524 = vadd.xlane.f32.xlu0 %v523_v2 }
  0xa2   : > { %v525_v3 = vpop.xlane.xlu0 %524 }
  0xa3   : > { %v527_v4 = vmul.f32 0.03125, %v525_v3 }
  0xa5   : > { %v528_v5 = vsub.f32 %v2077_v1, %v527_v4 }
  0xa7   : > { %v529_v6 = vmul.f32 %v528_v5, %v528_v5 }
  0xa9   : > { %v530_v7 = vsel %vm522_vm0, %v529_v6, 0.0 }
  0xaa   : > { %531 = vadd.xlane.f32.xlu0 %v530_v7 }
 0x137   : > { %v532_v11 = vpop.xlane.xlu0 %531 }
 0x138   : > { %v533_v12 = vmul.f32 0.03125, %v532_v11 }
 0x13a   : > { %v534_v13 = vadd.f32 1e-05, %v533_v12 }
 0x13c   : > { %1934 = vrsqrt.f32 %v534_v13 }
 0x146   : > { %v1935_v14 = vpop.eup %1934 }
 0x147   : > { %v536_v16 = vmul.f32 %v1935_v14, %v528_v5 }
 0x149   : > { %v543_v18 = vmul.f32 %v1662_v15, %v536_v16 }
 0x14b   : > { %v550_v19 = vadd.f32 %v1663_v17, %v543_v18 }
 0x14d   : > { %v2103_v20 = vpack.c.bf16 %v550_v19, %v550_v19 }
 0x14f   : > { %1756 = vmatmul.mubr.msk.bf16.vlgmr.msra.gmra.mrb[0].mxu0 %vm522_vm0, %v2103_v20  ;;  %v1267_v11 = vrot.slane %v2103_v20, 7 }
 0x150   : > { %1767 = vmatprep.mubr.msk.bf16.mxu0 %vm1963_vm1, %v1962_v9 }
 0x151   : > { %v2169_v12 = vsel %vm1268_vm5, 0, %v1267_v11  ;;  %v620_v11 = vld [vmem:[%s2334_s4 + $0xc] sm:$0xf] }
 0x152   : > { %v1274_v13 = vshll.u32 %v2169_v12, 16  ;;  %v1272_v15 = vshrl.u32 %v2169_v12, 16  ;;  %v1281_v17 = vrot.slane %v2169_v12, 1 }
 0x154   : > { %v1276_v14 = vrot.slane %v1274_v13, 1 }
 0x156   : > { %v1277_v16 = vor.u32 %v1276_v14, %v1272_v15  ;;  %v1223_v15 = vsel %vm697_vm2, %v620_v11, 0 }
 0x222   : > { %v605_v21 = vpop.f32.mrb[0].mxu0 }
 0x223   : > { %v2109_v22 = vpack.c.bf16 %v605_v21, %v605_v21  ;;  %v1757_v23 = vpop.f32.mrb[1].mxu0 }
 0x224   : > { %v608_v24 = vpop.f32.mrb[2].mxu0 }
 0x225   : > { %692 = vrot.lane.b32.xlu0 %v2109_v22, %s1964_s19  ;;  %630 = vrot.lane.b32.xlu1 %v2109_v22, %s1965_s20  ;;  %v1758_v25 = vpop.f32.mrb[3].mxu0 }
 0x297   : > { %v693_v26 = vpop.permute.xlu0 %692  ;;  %v631_v27 = vpop.permute.xlu1 %630 }
 0x298   : > { %v699_v28 = vsel %vm697_vm2, %v693_v26, 0  ;;  %v637_v29 = vsel %vm632_vm3, %v631_v27, 0 }
 0x299   : > { %1760 = vmatpush3.bf16.xpose.msra.mxu1 %v637_v29  ;;  %1766 = vmatpush3.bf16.msra.mxu0 %v699_v28 }
 0x29a   : > { %1777 = vmatprep.subr.bf16.mxu0 %v1962_v9  ;;  %1771 = vmatprep.subr.bf16.mxu1 %v1962_v9 }
 0x2a0   : > { %1762 = vmatmul.mubr.msk.bf16.vlgmr.msra.gmra.mrb[0].mxu1 %vm632_vm3, %v2109_v22 }
 0x2a1   : > { %1773 = vmatprep.mubr.msk.bf16.mxu1 %vm1963_vm1, %v1962_v9  ;;  %1772 = vmatpush3.bf16.msra.mxu1 %v746_v55 }
 0x2a2   : > { %1783 = vmatprep.subr.bf16.mxu1 %v1962_v9 }
 0x373   : > { %v673_v33 = vpop.f32.mrb[0].mxu1 }
 0x374   : > { %v679_v34 = vsel %vm616_vm4, %v673_v33, -inf  ;;  %v1763_v35 = vpop.f32.mrb[1].mxu1 }
 0x375   : > { %v676_v36 = vpop.f32.mrb[2].mxu1  ;;  %v680_v37 = vsel %vm632_vm3, %v679_v34, -inf }
 0x376   : > { %681 = vmax.xlane.f32.xlu1 %v680_v37  ;;  %v1764_v38 = vpop.f32.mrb[3].mxu1 }
 0x387   : > { %950 = vrot.lane.b32.xlu1 %v2109_v22, %s1966_s15 }
 0x403   : > { %v682_v39 = vpop.xlane.xlu1 %681 }
 0x404   : > { %v683_v40 = vsub.f32 %v679_v34, %v682_v39 }
 0x406   : > { %v684_v41 = vmul.f32 1.442695, %v683_v40 }
 0x407   : > { %v951_v50 = vpop.permute.xlu1 %950 }
 0x408   : > { %1936 = vpow2.f32 %v684_v41  ;;  %v956_v52 = vsel %vm632_vm3, %v951_v50, 0 }
 0x412   : > { %v1937_v42 = vpop.eup %1936 }
 0x413   : > { %v686_v43 = vsel %vm632_vm3, %v1937_v42, 0.0 }
 0x414   : > { %687 = vadd.xlane.f32.xlu0 %v686_v43 }
 0x42a   : > { %791 = vrot.lane.b32.xlu0 %v2109_v22, %s1967_s23  ;;  %s1975_s23 = smov 40  }
 0x42e   : > { %789 = vrot.lane.b32.xlu0 %v2109_v22, %s1968_s24 }
 0x432   : > { %948 = vrot.lane.b32.xlu0 %v2109_v22, %s1969_s25 }
 0x4a1   : > { %v688_v44 = vpop.xlane.xlu0 %687 }
 0x4a2   : > { %1938 = vrcp.f32 %v688_v44 }
 0x4a5   : > { %v792_v47 = vpop.permute.xlu0 %791 }
 0x4a6   : > { %v797_v49 = vsel %vm632_vm3, %v792_v47, 0 }
 0x4a9   : > { %v790_v51 = vpop.permute.xlu0 %789 }
 0x4ac   : > { %v1939_v45 = vpop.eup %1938 }
 0x4ad   : > { %v690_v46 = vmul.f32 %v1939_v45, %v1937_v42  ;;  %v949_v53 = vpop.permute.xlu0 %948 }
 0x4af   : > { %v691_v48 = vpack.c.bf16 %v690_v46, %v690_v46  ;;  %v618_v46 = vld [vmem:[%s2334_s4 + $0x4] sm:$0xf] }
 0x4b0   : > { %v905_v47 = vsel %vm697_vm2, %v618_v46, 0  ;;  %v1924_v46 = vld [vmem:[%s2340_s10] sm:$0xff]  }
 0x4b1   : > { %1768 = vmatmul.mubr.msk.bf16.vlgmr.msra.gmra.mrb[4].mxu0 %vm632_vm3, %v691_v48 }
 0x4b2   : > { %1778 = vmatpush3.bf16.xpose.msra.mxu0 %v797_v49  ;;  %1779 = vmatprep.mubr.msk.bf16.mxu0 %vm1963_vm1, %v1962_v9 }
 0x4b3   : > { %1795 = vmatprep.subr.bf16.mxu0 %v1962_v9 }
 0x4b9   : > { %1780 = vmatmul.mubr.msk.bf16.vlgmr.msra.gmra.mrb[8].mxu0 %vm632_vm3, %v790_v51 }
 0x4ba   : > { %1796 = vmatpush3.bf16.xpose.msra.mxu0 %v956_v52  ;;  %1797 = vmatprep.mubr.msk.bf16.mxu0 %vm1963_vm1, %v1962_v9 }
 0x4bb   : > { %1801 = vmatprep.subr.bf16.mxu0 %v1962_v9 }
 0x4c1   : > { %1798 = vmatmul.mubr.msk.bf16.vlgmr.msra.gmra.mrb[12].mxu0 %vm632_vm3, %v949_v53 }
 0x4c2   : > { %1803 = vmatprep.mubr.msk.bf16.mxu0 %vm1963_vm1, %v1962_v9 }
 0x584   : > { %v735_v56 = vpop.f32.mrb[4].mxu0 }
 0x585   : > { %v741_v57 = vpack.c.bf16 %v735_v56, %v735_v56  ;;  %v1769_v58 = vpop.f32.mrb[5].mxu0 }
 0x586   : > { %v738_v59 = vpop.f32.mrb[6].mxu0  ;;  %v619_v58 = vld [vmem:[%s2334_s4 + $0x8] sm:$0xf] }
 0x587   : > { %v1770_v60 = vpop.f32.mrb[7].mxu0  ;;  %1774 = vmatmul.mubr.msk.bf16.vlgmr.msra.gmra.mrb[4].mxu1 %vm632_vm3, %v741_v57 }
 0x588   : > { %1785 = vmatprep.mubr.msk.bf16.mxu1 %vm1963_vm1, %v1962_v9 }
 0x58c   : > { %v833_v61 = vpop.f32.mrb[8].mxu0 }
 0x58d   : > { %v1781_v62 = vpop.f32.mrb[9].mxu0  ;;  %v839_v8 = vsel %vm616_vm4, %v833_v61, -inf }
 0x58e   : > { %v836_v63 = vpop.f32.mrb[10].mxu0  ;;  %v840_v10 = vsel %vm632_vm3, %v839_v8, -inf  ;;  %v1064_v62 = vsel %vm697_vm2, %v619_v58, 0 }
 0x58f   : > { %v1782_v0 = vpop.f32.mrb[11].mxu0 }
 0x594   : > { %v992_v2 = vpop.f32.mrb[12].mxu0 }
 0x595   : > { %v998_v3 = vsel %vm616_vm4, %v992_v2, -inf  ;;  %v1799_v4 = vpop.f32.mrb[13].mxu0 }
 0x596   : > { %v995_v5 = vpop.f32.mrb[14].mxu0  ;;  %v999_v6 = vsel %vm632_vm3, %v998_v3, -inf }
 0x597   : > { %1000 = vmax.xlane.f32.xlu0 %v999_v6  ;;  %v1800_v7 = vpop.f32.mrb[15].mxu0 }
 0x5ad   : > { %1011 = vrot.lane.b32.xlu0 %v2109_v22, %s1970_s28 }
 0x5b1   : > { %1107 = vrot.lane.b32.xlu0 %v2109_v22, %s1971_s29 }
 0x5d0   : > { %841 = vmax.xlane.f32.xlu0 %v840_v10 }
 0x5e6   : > { %852 = vrot.lane.b32.xlu0 %v2109_v22, %s1972_s30  ;;  %s516_s30 = scalar_lea.vmem %s2346_s16, %s1660_s14 }
 0x5ea   : > { %1278 = vrot.lane.b32.xlu0 %v1277_v16, %s1973_s0  ;;  %v1918_v16 = vld [vmem:[%s2336_s6] sm:$0xff]  }
 0x5ee   : > { %1282 = vrot.lane.b32.xlu0 %v1281_v17, %s1964_s19 }
 0x624   : > { %v1001_v18 = vpop.xlane.xlu0 %1000 }
 0x625   : > { %v1002_v19 = vsub.f32 %v998_v3, %v1001_v18 }
 0x627   : > { %v1003_v20 = vmul.f32 1.442695, %v1002_v19 }
 0x628   : > { %v1012_v21 = vpop.permute.xlu0 %1011 }
 0x629   : > { %1940 = vpow2.f32 %v1003_v20  ;;  %v1017_v23 = vsel %vm697_vm2, %v1012_v21, 0  ;;  %v1919_v21 = vld [vmem:[%s2336_s6 + $0x8] sm:$0xff]  }
 0x62a   : > { %1802 = vmatpush3.bf16.msra.mxu0 %v1017_v23  ;;  %v1920_v23 = vld [vmem:[%s2336_s6 + $0x10] sm:$0xff]  }
 0x62b   : > { %1813 = vmatprep.subr.bf16.mxu0 %v1962_v9 }
 0x62c   : > { %v1108_v26 = vpop.permute.xlu0 %1107 }
 0x633   : > { %v1941_v24 = vpop.eup %1940 }
 0x634   : > { %v1005_v25 = vsel %vm632_vm3, %v1941_v24, 0.0 }
 0x635   : > { %1006 = vadd.xlane.f32.xlu1 %v1005_v25  ;;  %v1922_v25 = vld [vmem:[%s2336_s6 + $0x20] sm:$0xff]  }
 0x646   : > { %1109 = vrot.lane.b32.xlu1 %v2109_v22, %s1974_s17 }
 0x65d   : > { %v842_v27 = vpop.xlane.xlu0 %841 }
 0x65e   : > { %v843_v28 = vsub.f32 %v839_v8, %v842_v27  ;;  %v1923_v27 = vld [vmem:[%s2336_s6 + $0x28] sm:$0xff]  }
 0x660   : > { %v844_v29 = vmul.f32 1.442695, %v843_v28 }
 0x661   : > { %v853_v30 = vpop.permute.xlu0 %852 }
 0x662   : > { %1942 = vpow2.f32 %v844_v29  ;;  %v858_v33 = vsel %vm697_vm2, %v853_v30, 0 }
 0x663   : > { %1784 = vmatpush3.bf16.msra.mxu1 %v858_v33  ;;  %v1667_v33 = vld [vmem:[%s2335_s5] ss:$0 sm:$0xff] }
 0x664   : > { %1789 = vmatprep.subr.bf16.mxu1 %v1962_v9 }
 0x66c   : > { %v1943_v34 = vpop.eup %1942 }
 0x66d   : > { %v846_v35 = vsel %vm632_vm3, %v1943_v34, 0.0 }
 0x66e   : > { %847 = vadd.xlane.f32.xlu1 %v846_v35  ;;  %v1680_v35 = vld [vmem:[%s2337_s7] ss:$0 sm:$0xff] }
 0x6c2   : > { %v1007_v36 = vpop.xlane.xlu1 %1006 }
 0x6c3   : > { %1944 = vrcp.f32 %v1007_v36 }
 0x6c6   : > { %v1110_v39 = vpop.permute.xlu1 %1109 }
 0x6c7   : > { %v1115_v41 = vsel %vm632_vm3, %v1110_v39, 0 }
 0x6cd   : > { %v1945_v37 = vpop.eup %1944 }
 0x6ce   : > { %v1009_v38 = vmul.f32 %v1945_v37, %v1941_v24  ;;  %v1921_v24 = vld [vmem:[%s2336_s6 + $0x18] sm:$0xff]  }
 0x6d0   : > { %v1010_v40 = vpack.c.bf16 %v1009_v38, %v1009_v38 }
 0x6d2   : > { %1804 = vmatmul.mubr.msk.bf16.vlgmr.msra.gmra.mrb[16].mxu0 %vm632_vm3, %v1010_v40 }
 0x6d3   : > { %1814 = vmatpush3.bf16.xpose.msra.mxu0 %v1115_v41  ;;  %1815 = vmatprep.mubr.msk.bf16.mxu0 %vm1963_vm1, %v1962_v9 }
 0x6d4   : > { %1847 = vmatprep.subr.bf16.mxu0 %v1962_v9 }
 0x6da   : > { %1816 = vmatmul.mubr.msk.bf16.vlgmr.msra.gmra.mrb[20].mxu0 %vm632_vm3, %v1108_v26  ;;  %v1279_v26 = vpop.permute.xlu0 %1278 }
 0x6db   : > { %1851 = vmatprep.mubr.msk.bf16.mxu0 %vm1963_vm1, %v1962_v9  ;;  %v1285_v29 = vsel %vm522_vm0, %v2169_v12, %v1279_v26  ;;  %1848 = vmatpush3.bf16.msra.mxu0 %v1924_v46 }
 0x6dc   : > { %1849 = vmatprep.subr.bf16.mxu0 %v1962_v9 }
 0x6de   : > { %v1283_v28 = vpop.permute.xlu0 %1282 }
 0x6df   : > { %v1288_v30 = vsel %vm1286_vm6, %v1285_v29, %v1283_v28 }
 0x6fb   : > { %v848_v42 = vpop.xlane.xlu1 %847 }
 0x6fc   : > { %1946 = vrcp.f32 %v848_v42 }
 0x706   : > { %v1947_v43 = vpop.eup %1946 }
 0x707   : > { %v850_v44 = vmul.f32 %v1947_v43, %v1943_v34  ;;  %v1875_v34 = vadd.f32 %v1667_v33, %v2077_v1 }
 0x709   : > { %v851_v45 = vpack.c.bf16 %v850_v44, %v850_v44  ;;  %v1876_v36 = vadd.f32 %v1875_v34, %v1680_v35 }
 0x70b   : > { %1786 = vmatmul.mubr.msk.bf16.vlgmr.msra.gmra.mrb[8].mxu1 %vm632_vm3, %v851_v45 }
 0x70c   : > { %1791 = vmatprep.mubr.msk.bf16.mxu1 %vm1963_vm1, %v1962_v9  ;;  %1790 = vmatpush3.bf16.msra.mxu1 %v905_v47  ;;  %v1925_v47 = vld [vmem:[%s2340_s10 + $0x8] sm:$0xff]  }
 0x70d   : > { %1807 = vmatprep.subr.bf16.mxu1 %v1962_v9  ;;  %1850 = vmatpush3.bf16.msra.mxu0 %v1925_v47 }
 0x70e   : > { %1855 = vmatprep.subr.bf16.mxu0 %v1962_v9 }
 0x7a5   : > { %v1053_v48 = vpop.f32.mrb[16].mxu0 }
 0x7a6   : > { %v1805_v49 = vpop.f32.mrb[17].mxu0  ;;  %v1059_v31 = vpack.c.bf16 %v1053_v48, %v1053_v48 }
 0x7a7   : > { %v1056_v50 = vpop.f32.mrb[18].mxu0 }
 0x7a8   : > { %v1806_v51 = vpop.f32.mrb[19].mxu0 }
 0x7ad   : > { %v1151_v52 = vpop.f32.mrb[20].mxu0 }
 0x7ae   : > { %v1157_v53 = vsel %vm616_vm4, %v1151_v52, -inf  ;;  %v1817_v54 = vpop.f32.mrb[21].mxu0  ;;  %v1688_v52 = vld [vmem:[%s2338_s8] ss:$0 sm:$0xff] }
 0x7af   : > { %v1154_v55 = vpop.f32.mrb[22].mxu0  ;;  %v1158_v56 = vsel %vm632_vm3, %v1157_v53, -inf  ;;  %v1689_v54 = vld [vmem:[%s2339_s9] ss:$0 sm:$0xff] }
 0x7b0   : > { %1159 = vmax.xlane.f32.xlu1 %v1158_v56  ;;  %v1818_v57 = vpop.f32.mrb[23].mxu0 }
 0x7b1   : > { %v1926_v57 = vld [vmem:[%s2342_s12] sm:$0xff]  }
 0x7de   : > { %v894_v59 = vpop.f32.mrb[8].mxu1 }
 0x7df   : > { %v900_v60 = vpack.c.bf16 %v894_v59, %v894_v59  ;;  %v1787_v61 = vpop.f32.mrb[9].mxu1  ;;  %v1927_v59 = vld [vmem:[%s2342_s12 + $0x8] sm:$0xff]  }
 0x7e0   : > { %v897_v63 = vpop.f32.mrb[10].mxu1  ;;  %v1929_v61 = vld [vmem:[%s2342_s12 + $0x18] sm:$0xff]  }
 0x7e1   : > { %v1788_v0 = vpop.f32.mrb[11].mxu1  ;;  %1792 = vmatmul.mubr.msk.bf16.vlgmr.msra.gmra.mrb[4].mxu1 %vm632_vm3, %v900_v60  ;;  %v1928_v60 = vld [vmem:[%s2342_s12 + $0x10] sm:$0xff]   ;;  %v1931_v63 = vld [vmem:[%s2342_s12 + $0x28] sm:$0xff]  }
 0x7e2   : > { %1808 = vmatpush3.bf16.msra.mxu1 %v1064_v62  ;;  %1809 = vmatprep.mubr.msk.bf16.mxu1 %vm1963_vm1, %v1962_v9  ;;  %v1930_v62 = vld [vmem:[%s2342_s12 + $0x20] sm:$0xff]   ;;  %v1932_v0 = vld [vmem:[%s2342_s12 + $0x30] sm:$0xff]  }
 0x7e3   : > { %1819 = vmatprep.subr.bf16.mxu1 %v1962_v9 }
 0x7ed   : > { %1810 = vmatmul.mubr.msk.bf16.vlgmr.msra.gmra.mrb[4].mxu1 %vm632_vm3, %v1059_v31  ;;  %v1933_v31 = vld [vmem:[%s2342_s12 + $0x38] sm:$0xff]  }
 0x7ee   : > { %1821 = vmatprep.mubr.msk.bf16.mxu1 %vm1963_vm1, %v1962_v9 }
 0x83d   : > { %v1160_v32 = vpop.xlane.xlu1 %1159 }
 0x83e   : > { %v1161_v2 = vsub.f32 %v1157_v53, %v1160_v32  ;;  %v1690_v32 = vld [vmem:[%s2341_s11] ss:$0 sm:$0xff] }
 0x840   : > { %v1162_v3 = vmul.f32 1.442695, %v1161_v2 }
 0x842   : > { %1948 = vpow2.f32 %v1162_v3 }
 0x84c   : > { %v1949_v4 = vpop.eup %1948 }
 0x84d   : > { %v1164_v5 = vsel %vm632_vm3, %v1949_v4, 0.0 }
 0x84e   : > { %1165 = vadd.xlane.f32.xlu1 %v1164_v5 }
 0x85f   : > { %1170 = vrot.lane.b32.xlu1 %v2109_v22, %s1975_s23 }
 0x8db   : > { %v1166_v6 = vpop.xlane.xlu1 %1165 }
 0x8dc   : > { %1950 = vrcp.f32 %v1166_v6 }
 0x8df   : > { %v1171_v7 = vpop.permute.xlu1 %1170 }
 0x8e0   : > { %v1176_v8 = vsel %vm697_vm2, %v1171_v7, 0 }
 0x8e1   : > { %1820 = vmatpush3.bf16.msra.mxu1 %v1176_v8 }
 0x8e2   : > { %1825 = vmatprep.subr.bf16.mxu1 %v1962_v9 }
 0x8e6   : > { %v1951_v10 = vpop.eup %1950 }
 0x8e7   : > { %v1168_v13 = vmul.f32 %v1951_v10, %v1949_v4 }
 0x8e9   : > { %v1169_v14 = vpack.c.bf16 %v1168_v13, %v1168_v13 }
 0x8eb   : > { %1822 = vmatmul.mubr.msk.bf16.vlgmr.msra.gmra.mrb[12].mxu1 %vm632_vm3, %v1169_v14 }
 0x8ec   : > { %1826 = vmatpush3.bf16.msra.mxu1 %v1223_v15  ;;  %1827 = vmatprep.mubr.msk.bf16.mxu1 %vm1963_vm1, %v1962_v9 }
 0x8ed   : > { %1831 = vmatprep.subr.bf16.mxu1 %v1962_v9 }
 0x9be   : > { %v1212_v22 = vpop.f32.mrb[12].mxu1 }
 0x9bf   : > { %v1218_v17 = vpack.c.bf16 %v1212_v22, %v1212_v22  ;;  %v1823_v18 = vpop.f32.mrb[13].mxu1 }
 0x9c0   : > { %v1215_v19 = vpop.f32.mrb[14].mxu1 }
 0x9c1   : > { %v1824_v20 = vpop.f32.mrb[15].mxu1  ;;  %1828 = vmatmul.mubr.msk.bf16.vlgmr.msra.gmra.mrb[4].mxu1 %vm632_vm3, %v1218_v17 }
 0x9c2   : > { %1832 = vmatpush3.bf16.msra.mxu1 %v1918_v16  ;;  %1843 = vmatprep.mubr.msk.bf16.mxu1 %vm1963_vm1, %v1962_v9 }
 0x9c3   : > { %1833 = vmatprep.subr.bf16.mxu1 %v1962_v9 }
 0x9c6   : > { %1834 = vmatpush3.bf16.msra.mxu1 %v1919_v21 }
 0x9c7   : > { %1835 = vmatprep.subr.bf16.mxu1 %v1962_v9 }
 0x9ca   : > { %1836 = vmatpush3.bf16.msra.mxu1 %v1920_v23 }
 0x9cb   : > { %1837 = vmatprep.subr.bf16.mxu1 %v1962_v9 }
 0x9ce   : > { %1838 = vmatpush3.bf16.msra.mxu1 %v1921_v24 }
 0x9cf   : > { %1839 = vmatprep.subr.bf16.mxu1 %v1962_v9 }
 0x9d2   : > { %1840 = vmatpush3.bf16.msra.mxu1 %v1922_v25 }
 0x9d3   : > { %1841 = vmatprep.subr.bf16.mxu1 %v1962_v9 }
 0x9d6   : > { %1842 = vmatpush3.bf16.msra.mxu1 %v1923_v27 }
 0x9d9   : > { %1844 = vmatmul.mubr.msk.bf16.vlgmr.msra.gmra.mrb[4].mxu1 %vm1344_vm7, %v1288_v30 }
 0xaac   : > { %v1381_v37 = vpop.f32.mrb[4].mxu1 }
 0xaad   : > { %v2261_v38 = vadd.f32 %v1876_v36, %v1381_v37  ;;  %v1845_v39 = vpop.f32.mrb[5].mxu1 }
 0xaae   : > { %v1384_v40 = vpop.f32.mrb[6].mxu1 }
 0xaaf   : > { %v1846_v41 = vpop.f32.mrb[7].mxu1  ;;  %v1391_v12 = vsel %vm522_vm0, %v2261_v38, 0.0 }
 0xab0   : > { %1392 = vadd.xlane.f32.xlu0 %v1391_v12 }
 0xb3d   : > { %v1393_v42 = vpop.xlane.xlu0 %1392 }
 0xb3e   : > { %v1394_v43 = vmul.f32 0.03125, %v1393_v42 }
 0xb40   : > { %v1395_v44 = vsub.f32 %v2261_v38, %v1394_v43 }
 0xb42   : > { %v1396_v1 = vmul.f32 %v1395_v44, %v1395_v44 }
 0xb44   : > { %v1397_v45 = vsel %vm522_vm0, %v1396_v1, 0.0 }
 0xb45   : > { %1398 = vadd.xlane.f32.xlu1 %v1397_v45 }
 0xbd2   : > { %v1399_v48 = vpop.xlane.xlu1 %1398 }
 0xbd3   : > { %v1400_v49 = vmul.f32 0.03125, %v1399_v48 }
 0xbd5   : > { %v1401_v50 = vadd.f32 1e-05, %v1400_v49 }
 0xbd7   : > { %1952 = vrsqrt.f32 %v1401_v50 }
 0xbe1   : > { %v1953_v51 = vpop.eup %1952 }
 0xbe2   : > { %v1403_v53 = vmul.f32 %v1953_v51, %v1395_v44 }
 0xbe4   : > { %v1410_v55 = vmul.f32 %v1688_v52, %v1403_v53 }
 0xbe6   : > { %v1417_v56 = vadd.f32 %v1689_v54, %v1410_v55 }
 0xbe8   : > { %v1418_v58 = vpack.c.bf16 %v1417_v56, %v1417_v56 }
 0xbea   : > { %1852 = vmatmul.mubr.msk.bf16.vlgmr.msra.gmra.mrb[24].mxu0 %vm522_vm0, %v1418_v58 }
 0xbeb   : > { %1856 = vmatpush3.bf16.msra.mxu0 %v1926_v57  ;;  %1871 = vmatprep.mubr.msk.bf16.mxu0 %vm1963_vm1, %v1962_v9 }
 0xbec   : > { %1857 = vmatprep.subr.bf16.mxu0 %v1962_v9 }
 0xbef   : > { %1858 = vmatpush3.bf16.msra.mxu0 %v1927_v59 }
 0xbf0   : > { %1859 = vmatprep.subr.bf16.mxu0 %v1962_v9 }
 0xbf3   : > { %1860 = vmatpush3.bf16.msra.mxu0 %v1928_v60 }
 0xbf4   : > { %1861 = vmatprep.subr.bf16.mxu0 %v1962_v9 }
 0xbf7   : > { %1862 = vmatpush3.bf16.msra.mxu0 %v1929_v61 }
 0xbf8   : > { %1863 = vmatprep.subr.bf16.mxu0 %v1962_v9 }
 0xbfb   : > { %1864 = vmatpush3.bf16.msra.mxu0 %v1930_v62 }
 0xbfc   : > { %1865 = vmatprep.subr.bf16.mxu0 %v1962_v9 }
 0xbff   : > { %1866 = vmatpush3.bf16.msra.mxu0 %v1931_v63 }
 0xc00   : > { %1867 = vmatprep.subr.bf16.mxu0 %v1962_v9 }
 0xc03   : > { %1868 = vmatpush3.bf16.msra.mxu0 %v1932_v0 }
 0xc04   : > { %1869 = vmatprep.subr.bf16.mxu0 %v1962_v9  ;;  %v1694_v9 = vld [vmem:[%s2343_s13] ss:$0 sm:$0xff] }
 0xc07   : > { %1870 = vmatpush3.bf16.msra.mxu0 %v1933_v31 }
 0xcbd   : > { %v1479_v2 = vpop.f32.mrb[24].mxu0 }
 0xcbe   : > { %v1480_v3 = vadd.f32 %v1690_v32, %v1479_v2  ;;  %v1853_v4 = vpop.f32.mrb[25].mxu0 }
 0xcbf   : > { %v1482_v5 = vpop.f32.mrb[26].mxu0 }
 0xcc0   : > { %v1485_v6 = vmax.f32 %v1480_v3, 0.0  ;;  %v1854_v7 = vpop.f32.mrb[27].mxu0 }
 0xcc2   : > { %v1486_v8 = vpack.c.bf16 %v1485_v6, %v1485_v6 }
 0xcc4   : > { %1872 = vmatmul.mubr.bf16.vlgmr.msra.gmra.mrb[28].mxu0 %v1486_v8 }
 0xd97   : > { %v1592_v10 = vpop.f32.mrb[28].mxu0 }
 0xd98   : > { %v1593_v11 = vadd.f32 %v1694_v9, %v1592_v10  ;;  %v1873_v13 = vpop.f32.mrb[29].mxu0 }
 0xd99   : > { %v1595_v14 = vpop.f32.mrb[30].mxu0 }
 0xd9a   : > { %v1598_v15 = vadd.f32 %v2261_v38, %v1593_v11  ;;  %v1874_v22 = vpop.f32.mrb[31].mxu0 }
 0xd9c   : > { %v1599_v16 = vpack.c.bf16 %v1598_v15, %v1598_v15 }
 0xd9e   : > { %1601 = vst.msk [vmem:[%s516_s30] sm:$0xf] %vm1600_vm8, %v1599_v16 }
 0xd9f PF: > { %s26_s21 = sadd.s32 1, %s1960_s21  }
 0xda0   : > { %p23_p4 = scmp.ge.s32.totalorder %s26_s21, 4  }
 0xda2   :  { %25 = sbr.rel (!%p23_p4) target bundleno = 2 (0x2), region = 114 }

</bundles_post_ra>
